<compile_context>
chip_gen: v5e
topology: v5e:2x2
jax: 0.10.0
libtpu: 0.0.40
codegen_flags: <defaults>
</compile_context>

<pallas_src>
import functools

import jax
import jax.numpy as jnp
from jax import lax
from jax.experimental import pallas as pl
from jax.experimental.pallas import tpu as pltpu


# ----------------------------------------------------------------------------
# Fused Pallas kernel
# ----------------------------------------------------------------------------
def _down3d_kernel(xp_ref, wdw1_ref, s1_ref, b1_ref, m1_ref, maskhw_ref,
                   wdw2_ref, s2_ref, b2_ref, m2_ref, mres_ref,
                   o_ref, y1_ref, *, e, D, TD, H, W, Cin, Cout):
    """One (sample, D-tile) step of the whole Down3D block.

    Layout: all spatial arrays are (d, h, w*C) with the W*C fold in the lane
    (minor) dimension.  xp_ref holds the full sample padded by 2*e (enough
    halo for both cascaded dilated convs); it stays resident across D-tiles.

    xp_ref:    (D+4e, H+4e, (W+4e)*Cin)   zero-padded input (resident per n)
    wdw1_ref:  (3, 9, (W+2e)*Cin)         stage-1 depthwise weights, W-tiled
    s1_ref:    (1, (W+2e)*Cin)            stage-1 fused BN scale (W-tiled)
    b1_ref:    (1, (W+2e)*Cin)            stage-1 fused BN bias  (W-tiled)
    m1_ref:    ((W+2e)*Cin, (W+2e)*Cin)   kron(I, w_pw1) block-diag pointwise
    maskhw_ref:(H+2e, (W+2e)*Cin)         1 inside the true y1 interior (h,w)
    wdw2_ref:  (3, 9, W*Cin)              stage-2 depthwise weights, W-tiled
    s2_ref:    (1, W*Cin)                 stage-2 fused BN scale
    b2_ref:    (1, W*Cin)                 stage-2 fused BN bias
    m2_ref:    (W*Cin, W*Cout)            kron(I, w_pw2)
    mres_ref:  (W*Cin, W*Cout)            kron(I, w_res)
    o_ref:     (TD, H, W*Cout)            output tile
    y1_ref:    (TD+2e, H+2e, (W+2e)*Cin)  VMEM scratch: zero-padded y1 tile
    """
    Hh, Wh = H + 2 * e, W + 2 * e
    TDh = TD + 2 * e
    Wc1 = Wh * Cin            # folded minor width on the stage-1 (halo) domain
    Wc2 = W * Cin             # folded minor width on the interior domain
    Wco = W * Cout

    db = pl.program_id(1) * TD          # interior D offset of this tile

    # ---------------- stage 1: depthwise dilated 3x3x3 conv -----------------
    # Computed on the (TDh, Hh, Wh) halo domain so stage 2 has its e-halo.
    def s1_body(kd, acc):
        w9 = wdw1_ref[kd]                                   # (9, Wc1)
        for kh in range(3):
            for kw in range(3):
                tap = xp_ref[pl.ds(db + kd * e, TDh),
                             pl.ds(kh * e, Hh),
                             pl.ds(kw * e * Cin, Wc1)]
                acc = acc + tap * w9[kh * 3 + kw]
        return acc

    acc1 = lax.fori_loop(0, 3, s1_body,
                         jnp.zeros((TDh, Hh, Wc1), jnp.float32))

    # BatchNorm (eval, fused scale/bias) + ReLU6
    y1 = jnp.clip(acc1 * s1_ref[...] + b1_ref[...], 0.0, 6.0)

    # Zero everything outside the true y1 interior.  This reproduces the zero
    # fixed_padding that the second InvertedResidual applies to y1.
    y1 = y1 * maskhw_ref[...]                               # static h/w mask
    d_ids = lax.broadcasted_iota(jnp.int32, (TDh, Hh, Wc1), 0) + (db - e)
    y1 = jnp.where(jnp.logical_and(d_ids >= 0, d_ids < D), y1, 0.0)

    # Pointwise 1x1x1 conv == block-diagonal matmul in the folded layout.
    y1 = jnp.dot(y1.reshape(TDh * Hh, Wc1), m1_ref[...],
                 preferred_element_type=jnp.float32)
    y1_ref[...] = y1.reshape(TDh, Hh, Wc1)

    # ---------------- stage 2: depthwise dilated 3x3x3 conv -----------------
    def s2_body(kd, acc):
        w9 = wdw2_ref[kd]                                   # (9, Wc2)
        for kh in range(3):
            for kw in range(3):
                tap = y1_ref[pl.ds(kd * e, TD),
                             pl.ds(kh * e, H),
                             pl.ds(kw * e * Cin, Wc2)]
                acc = acc + tap * w9[kh * 3 + kw]
        return acc

    acc2 = lax.fori_loop(0, 3, s2_body,
                         jnp.zeros((TD, H, Wc2), jnp.float32))
    y2 = jnp.clip(acc2 * s2_ref[...] + b2_ref[...], 0.0, 6.0)
    y2 = jnp.dot(y2.reshape(TD * H, Wc2), m2_ref[...],
                 preferred_element_type=jnp.float32)

    # ---------------- resnet 1x1x1 conv + residual add ----------------------
    xi = xp_ref[pl.ds(db + 2 * e, TD),
                pl.ds(2 * e, H),
                pl.ds(2 * e * Cin, Wc2)]
    res = jnp.dot(xi.reshape(TD * H, Wc2), mres_ref[...],
                  preferred_element_type=jnp.float32)

    o_ref[...] = (y2 + res).reshape(TD, H, Wco).astype(o_ref.dtype)


# ----------------------------------------------------------------------------
# pallas_call wrapper
# ----------------------------------------------------------------------------
def _down3d_pallas(xp, wdw1_t, s1, b1, m1, mask_hw, wdw2_t, s2, b2, m2, mres,
                   *, e, D, TD, H, W, Cin, Cout):
    N, Dp2, Hp2, Wp2c = xp.shape
    Hh, Wh = H + 2 * e, W + 2 * e
    TDh = TD + 2 * e
    Wc1, Wc2, Wco = Wh * Cin, W * Cin, W * Cout
    n_t = D // TD

    kern = functools.partial(_down3d_kernel, e=e, D=D, TD=TD, H=H, W=W,
                             Cin=Cin, Cout=Cout)

    # VMEM budget: double-buffered input/output blocks + y1 scratch + weights.
    fp = 4
    need = (2 * Dp2 * Hp2 * Wp2c * fp
            + 2 * TD * H * Wco * fp
            + TDh * Hh * Wc1 * fp
            + (27 * (Wc1 + Wc2) + Wc1 * Wc1 + 2 * Wc2 * Wco
               + Hh * Wc1 + 2 * Wc1 + 2 * Wc2) * fp
            + (4 << 20))                          # headroom for temporaries
    vmem_limit = int(min(max(need, 16 << 20), 56 << 20))

    zero2 = lambda n, t: (0, 0)
    zero3 = lambda n, t: (0, 0, 0)

    return pl.pallas_call(
        kern,
        out_shape=jax.ShapeDtypeStruct((N, D, H, Wco), jnp.float32),
        grid=(N, n_t),
        in_specs=[
            # full padded sample, resident across D-tiles of the same n
            pl.BlockSpec((None, Dp2, Hp2, Wp2c), lambda n, t: (n, 0, 0, 0)),
            pl.BlockSpec((3, 9, Wc1), zero3),
            pl.BlockSpec((1, Wc1), zero2),
            pl.BlockSpec((1, Wc1), zero2),
            pl.BlockSpec((Wc1, Wc1), zero2),
            pl.BlockSpec((Hh, Wc1), zero2),
            pl.BlockSpec((3, 9, Wc2), zero3),
            pl.BlockSpec((1, Wc2), zero2),
            pl.BlockSpec((1, Wc2), zero2),
            pl.BlockSpec((Wc2, Wco), zero2),
            pl.BlockSpec((Wc2, Wco), zero2),
        ],
        out_specs=pl.BlockSpec((None, TD, H, Wco), lambda n, t: (n, t, 0, 0)),
        scratch_shapes=[pltpu.VMEM((TDh, Hh, Wc1), jnp.float32)],
        compiler_params=pltpu.CompilerParams(
            dimension_semantics=("parallel", "parallel"),
            vmem_limit_bytes=vmem_limit),
    )(xp, wdw1_t, s1, b1, m1, mask_hw, wdw2_t, s2, b2, m2, mres)


def _make_hw_mask(H, W, Cin, e, dtype):
    Hh, Wh = H + 2 * e, W + 2 * e
    mh = jnp.zeros((Hh,), dtype).at[e:e + H].set(1.0)
    mw = jnp.zeros((Wh,), dtype).at[e:e + W].set(1.0)
    m = mh[:, None, None] * mw[None, :, None] * jnp.ones((1, 1, Cin), dtype)
    return m.reshape(Hh, Wh * Cin)


def down3d_forward(x_ncdhw, params, expand, d_tile=None):
    """x_ncdhw: (N, Cin, D, H, W)  ->  (N, Cout, D, H, W)."""
    N, Cin, D, H, W = x_ncdhw.shape
    Cout = params["w_res"].shape[1]
    e = int(expand)
    if d_tile is None:
        d_tile = D if D <= 8 else next((c for c in (8, 4, 2) if D % c == 0), D)
    assert D % d_tile == 0, "d_tile must divide D"

    f32 = jnp.float32
    # NCDHW -> NDHWC, pad by 2*e (halo for BOTH cascaded dilated convs),
    # fold (W, C) into the lane dimension.
    x = jnp.transpose(x_ncdhw, (0, 2, 3, 4, 1)).astype(f32)
    p = 2 * e
    xp = jnp.pad(x, ((0, 0), (p, p), (p, p), (p, p), (0, 0)))
    xp = xp.reshape(N, D + 2 * p, H + 2 * p, (W + 2 * p) * Cin)

    Hh, Wh = H + 2 * e, W + 2 * e
    # Depthwise weights / BN params tiled over the folded W dimension.
    wdw1_t = jnp.tile(params["w_dw1"].astype(f32), (1, Wh)).reshape(3, 9, Wh * Cin)
    wdw2_t = jnp.tile(params["w_dw2"].astype(f32), (1, W)).reshape(3, 9, W * Cin)
    s1 = jnp.tile(params["scale1"].reshape(1, Cin).astype(f32), (1, Wh))
    b1 = jnp.tile(params["bias1"].reshape(1, Cin).astype(f32), (1, Wh))
    s2 = jnp.tile(params["scale2"].reshape(1, Cin).astype(f32), (1, W))
    b2 = jnp.tile(params["bias2"].reshape(1, Cin).astype(f32), (1, W))
    # Pointwise 1x1x1 convs as block-diagonal matrices in the folded layout.
    m1 = jnp.kron(jnp.eye(Wh, dtype=f32), params["w_pw1"].astype(f32))
    m2 = jnp.kron(jnp.eye(W, dtype=f32), params["w_pw2"].astype(f32))
    mres = jnp.kron(jnp.eye(W, dtype=f32), params["w_res"].astype(f32))
    mask_hw = _make_hw_mask(H, W, Cin, e, f32)

    out = _down3d_pallas(xp, wdw1_t, s1, b1, m1, mask_hw, wdw2_t, s2, b2, m2,
                         mres, e=e, D=D, TD=d_tile, H=H, W=W, Cin=Cin,
                         Cout=Cout)
    out = out.reshape(N, D, H, W, Cout)
    return jnp.transpose(out, (0, 4, 1, 2, 3))    # NDHWC -> NCDHW


# ----------------------------------------------------------------------------
# Pure-JAX reference (correctness sanity check)
# ----------------------------------------------------------------------------
def _ref_inv_res(x, w_dw, scale, bias, w_pw, expand):
    Cin = x.shape[-1]
    rhs_dw = w_dw.reshape(3, 3, 3, 1, Cin)
    dn = lax.conv_dimension_numbers(x.shape, rhs_dw.shape,
                                    ("NDHWC", "DHWIO", "NDHWC"))
    y = lax.conv_general_dilated(x, rhs_dw, (1, 1, 1),
                                 [(expand, expand)] * 3,
                                 rhs_dilation=(expand,) * 3,
                                 dimension_numbers=dn,
                                 feature_group_count=Cin)
    y = jnp.clip(y * scale + bias, 0.0, 6.0)
    return jnp.einsum("ndhwc,co->ndhwo", y, w_pw)


def _ref_down3d(x_ncdhw, p, expand):
    x = jnp.transpose(x_ncdhw, (0, 2, 3, 4, 1))
    r = jnp.einsum("ndhwc,co->ndhwo", x, p["w_res"])
    y1 = _ref_inv_res(x, p["w_dw1"], p["scale1"], p["bias1"], p["w_pw1"], expand)
    y2 = _ref_inv_res(y1, p["w_dw2"], p["scale2"], p["bias2"], p["w_pw2"], expand)
    return jnp.transpose(r + y2, (0, 4, 1, 2, 3))


# ----------------------------------------------------------------------------
if __name__ == "__main__":
    N, Cin, Cout = 2, 4, 8
    D = H = W = 8
    expand = 2

    key = jax.random.PRNGKey(0)
    ks = jax.random.split(key, 6)

    x = jax.random.normal(ks[0], (N, Cin, D, H, W), jnp.float32)

    # Synthetic parameters (shapes follow the module __init__).
    w_dw1 = 0.2 * jax.random.normal(ks[1], (27, Cin), jnp.float32)   # depthwise 3x3x3 per-channel
    w_pw1 = 0.2 * jax.random.normal(ks[2], (Cin, Cin), jnp.float32)  # pointwise Cin->Cin
    w_dw2 = 0.2 * jax.random.normal(ks[3], (27, Cin), jnp.float32)
    w_pw2 = 0.2 * jax.random.normal(ks[4], (Cin, Cout), jnp.float32) # pointwise Cin->Cout
    w_res = 0.2 * jax.random.normal(ks[5], (Cin, Cout), jnp.float32) # resnet 1x1x1 Cin->Cout

    # BatchNorm3d default init, eval-mode fusion.
    eps = 1e-5
    gamma = jnp.ones((Cin,), jnp.float32)
    beta = jnp.zeros((Cin,), jnp.float32)
    rmean = jnp.zeros((Cin,), jnp.float32)
    rvar = jnp.ones((Cin,), jnp.float32)
    scale = gamma / jnp.sqrt(rvar + eps)
    bias = beta - rmean * scale

    params = dict(w_dw1=w_dw1, w_pw1=w_pw1, scale1=scale, bias1=bias,
                  w_dw2=w_dw2, w_pw2=w_pw2, scale2=scale, bias2=bias,
                  w_res=w_res)

    ref = jax.block_until_ready(_ref_down3d(x, params, expand))

    # Validate both the multi-D-tile (halo/mask) path and the single-tile path.
    for d_tile in (4, 8):
        out = jax.block_until_ready(
            down3d_forward(x, params, expand, d_tile=d_tile))
        assert out.shape == (N, Cout, D, H, W), out.shape
        assert jnp.allclose(out, ref, rtol=1e-4, atol=1e-4), (
            d_tile, float(jnp.max(jnp.abs(out - ref))))

    print("KERNEL_OK")
</pallas_src>

<mosaic_0001>
module attributes {stable_mosaic.version = 11 : i64} {
  func.func @_down3d_kernel(%arg0: i32, %arg1: i32, %arg2: memref<1x16x16x64xf32, #tpu.memory_space<vmem>>, %arg3: memref<3x9x48xf32, #tpu.memory_space<vmem>>, %arg4: memref<1x48xf32, #tpu.memory_space<vmem>>, %arg5: memref<1x48xf32, #tpu.memory_space<vmem>>, %arg6: memref<48x48xf32, #tpu.memory_space<vmem>>, %arg7: memref<12x48xf32, #tpu.memory_space<vmem>>, %arg8: memref<3x9x32xf32, #tpu.memory_space<vmem>>, %arg9: memref<1x32xf32, #tpu.memory_space<vmem>>, %arg10: memref<1x32xf32, #tpu.memory_space<vmem>>, %arg11: memref<32x64xf32, #tpu.memory_space<vmem>>, %arg12: memref<32x64xf32, #tpu.memory_space<vmem>>, %arg13: memref<1x4x8x64xf32, #tpu.memory_space<vmem>>, %arg14: memref<8x12x48xf32, #tpu.memory_space<vmem>>) attributes {dimension_semantics = [#tpu.dimension_semantics<parallel>, #tpu.dimension_semantics<parallel>], iteration_bounds = array<i64: 2, 2>, scalar_prefetch = 0 : i64, scratch_operands = 1 : i64, tpu.core_type = #tpu.core_type<tc>, window_params = [{transform_indices = @transform_0, window_bounds = array<i64: 1, 16, 16, 64>}, {pipeline_mode = #tpu.pipeline_mode<synchronous>, transform_indices = @transform_1, window_bounds = array<i64: 3, 9, 48>}, {pipeline_mode = #tpu.pipeline_mode<synchronous>, transform_indices = @transform_2, window_bounds = array<i64: 1, 48>}, {pipeline_mode = #tpu.pipeline_mode<synchronous>, transform_indices = @transform_3, window_bounds = array<i64: 1, 48>}, {pipeline_mode = #tpu.pipeline_mode<synchronous>, transform_indices = @transform_4, window_bounds = array<i64: 48, 48>}, {pipeline_mode = #tpu.pipeline_mode<synchronous>, transform_indices = @transform_5, window_bounds = array<i64: 12, 48>}, {pipeline_mode = #tpu.pipeline_mode<synchronous>, transform_indices = @transform_6, window_bounds = array<i64: 3, 9, 32>}, {pipeline_mode = #tpu.pipeline_mode<synchronous>, transform_indices = @transform_7, window_bounds = array<i64: 1, 32>}, {pipeline_mode = #tpu.pipeline_mode<synchronous>, transform_indices = @transform_8, window_bounds = array<i64: 1, 32>}, {pipeline_mode = #tpu.pipeline_mode<synchronous>, transform_indices = @transform_9, window_bounds = array<i64: 32, 64>}, {pipeline_mode = #tpu.pipeline_mode<synchronous>, transform_indices = @transform_10, window_bounds = array<i64: 32, 64>}, {transform_indices = @transform_11, window_bounds = array<i64: 1, 4, 8, 64>}]} {
    %c4_i32 = arith.constant 4 : i32
    %0 = arith.muli %arg1, %c4_i32 : i32
    %cst = arith.constant 0.000000e+00 : f32
    %1 = vector.broadcast %cst : f32 to vector<8x12x48xf32>
    %c0_i32 = arith.constant 0 : i32
    %c3_i32 = arith.constant 3 : i32
    %2 = arith.addi %c0_i32, %c3_i32 : i32
    %c1_i32 = arith.constant 1 : i32
    %3 = scf.for %arg15 = %c0_i32 to %2 step %c1_i32 iter_args(%arg16 = %1) -> (vector<8x12x48xf32>)  : i32 {
      %66 = arith.index_cast %arg15 : i32 to index
      %c0_39 = arith.constant 0 : index
      %c0_40 = arith.constant 0 : index
      %67 = vector.load %arg3[%66, %c0_39, %c0_40] : memref<3x9x48xf32, #tpu.memory_space<vmem>>, vector<1x9x48xf32>
      %68 = vector.shape_cast %67 : vector<1x9x48xf32> to vector<9x48xf32>
      %c2_i32_41 = arith.constant 2 : i32
      %69 = arith.muli %arg15, %c2_i32_41 : i32
      %70 = arith.addi %0, %69 : i32
      %c0_42 = arith.constant 0 : index
      %71 = arith.index_cast %70 : i32 to index
      %c0_43 = arith.constant 0 : index
      %c0_44 = arith.constant 0 : index
      %72 = vector.load %arg2[%c0_42, %71, %c0_43, %c0_44] : memref<1x16x16x64xf32, #tpu.memory_space<vmem>>, vector<1x8x12x48xf32>
      %73 = vector.shape_cast %72 : vector<1x8x12x48xf32> to vector<8x12x48xf32>
      %74 = vector.extract_strided_slice %68 {offsets = [0, 0], sizes = [1, 48], strides = [1, 1]} : vector<9x48xf32> to vector<1x48xf32>
      %75 = vector.shape_cast %74 : vector<1x48xf32> to vector<48xf32>
      %76 = vector.shape_cast %75 : vector<48xf32> to vector<1x1x48xf32>
      %77 = vector.broadcast %76 : vector<1x1x48xf32> to vector<8x12x48xf32>
      %78 = arith.mulf %73, %77 : vector<8x12x48xf32>
      %79 = arith.addf %arg16, %78 : vector<8x12x48xf32>
      %c2_i32_45 = arith.constant 2 : i32
      %80 = arith.muli %arg15, %c2_i32_45 : i32
      %81 = arith.addi %0, %80 : i32
      %c0_46 = arith.constant 0 : index
      %82 = arith.index_cast %81 : i32 to index
      %c0_47 = arith.constant 0 : index
      %c8 = arith.constant 8 : index
      %83 = vector.load %arg2[%c0_46, %82, %c0_47, %c8] : memref<1x16x16x64xf32, #tpu.memory_space<vmem>>, vector<1x8x12x48xf32>
      %84 = vector.shape_cast %83 : vector<1x8x12x48xf32> to vector<8x12x48xf32>
      %85 = vector.extract_strided_slice %68 {offsets = [1, 0], sizes = [1, 48], strides = [1, 1]} : vector<9x48xf32> to vector<1x48xf32>
      %86 = vector.shape_cast %85 : vector<1x48xf32> to vector<48xf32>
      %87 = vector.shape_cast %86 : vector<48xf32> to vector<1x1x48xf32>
      %88 = vector.broadcast %87 : vector<1x1x48xf32> to vector<8x12x48xf32>
      %89 = arith.mulf %84, %88 : vector<8x12x48xf32>
      %90 = arith.addf %79, %89 : vector<8x12x48xf32>
      %c2_i32_48 = arith.constant 2 : i32
      %91 = arith.muli %arg15, %c2_i32_48 : i32
      %92 = arith.addi %0, %91 : i32
      %c0_49 = arith.constant 0 : index
      %93 = arith.index_cast %92 : i32 to index
      %c0_50 = arith.constant 0 : index
      %c16_51 = arith.constant 16 : index
      %94 = vector.load %arg2[%c0_49, %93, %c0_50, %c16_51] : memref<1x16x16x64xf32, #tpu.memory_space<vmem>>, vector<1x8x12x48xf32>
      %95 = vector.shape_cast %94 : vector<1x8x12x48xf32> to vector<8x12x48xf32>
      %96 = vector.extract_strided_slice %68 {offsets = [2, 0], sizes = [1, 48], strides = [1, 1]} : vector<9x48xf32> to vector<1x48xf32>
      %97 = vector.shape_cast %96 : vector<1x48xf32> to vector<48xf32>
      %98 = vector.shape_cast %97 : vector<48xf32> to vector<1x1x48xf32>
      %99 = vector.broadcast %98 : vector<1x1x48xf32> to vector<8x12x48xf32>
      %100 = arith.mulf %95, %99 : vector<8x12x48xf32>
      %101 = arith.addf %90, %100 : vector<8x12x48xf32>
      %c2_i32_52 = arith.constant 2 : i32
      %102 = arith.muli %arg15, %c2_i32_52 : i32
      %103 = arith.addi %0, %102 : i32
      %c0_53 = arith.constant 0 : index
      %104 = arith.index_cast %103 : i32 to index
      %c2 = arith.constant 2 : index
      %c0_54 = arith.constant 0 : index
      %105 = vector.load %arg2[%c0_53, %104, %c2, %c0_54] : memref<1x16x16x64xf32, #tpu.memory_space<vmem>>, vector<1x8x12x48xf32>
      %106 = vector.shape_cast %105 : vector<1x8x12x48xf32> to vector<8x12x48xf32>
      %107 = vector.extract_strided_slice %68 {offsets = [3, 0], sizes = [1, 48], strides = [1, 1]} : vector<9x48xf32> to vector<1x48xf32>
      %108 = vector.shape_cast %107 : vector<1x48xf32> to vector<48xf32>
      %109 = vector.shape_cast %108 : vector<48xf32> to vector<1x1x48xf32>
      %110 = vector.broadcast %109 : vector<1x1x48xf32> to vector<8x12x48xf32>
      %111 = arith.mulf %106, %110 : vector<8x12x48xf32>
      %112 = arith.addf %101, %111 : vector<8x12x48xf32>
      %c2_i32_55 = arith.constant 2 : i32
      %113 = arith.muli %arg15, %c2_i32_55 : i32
      %114 = arith.addi %0, %113 : i32
      %c0_56 = arith.constant 0 : index
      %115 = arith.index_cast %114 : i32 to index
      %c2_57 = arith.constant 2 : index
      %c8_58 = arith.constant 8 : index
      %116 = vector.load %arg2[%c0_56, %115, %c2_57, %c8_58] : memref<1x16x16x64xf32, #tpu.memory_space<vmem>>, vector<1x8x12x48xf32>
      %117 = vector.shape_cast %116 : vector<1x8x12x48xf32> to vector<8x12x48xf32>
      %118 = vector.extract_strided_slice %68 {offsets = [4, 0], sizes = [1, 48], strides = [1, 1]} : vector<9x48xf32> to vector<1x48xf32>
      %119 = vector.shape_cast %118 : vector<1x48xf32> to vector<48xf32>
      %120 = vector.shape_cast %119 : vector<48xf32> to vector<1x1x48xf32>
      %121 = vector.broadcast %120 : vector<1x1x48xf32> to vector<8x12x48xf32>
      %122 = arith.mulf %117, %121 : vector<8x12x48xf32>
      %123 = arith.addf %112, %122 : vector<8x12x48xf32>
      %c2_i32_59 = arith.constant 2 : i32
      %124 = arith.muli %arg15, %c2_i32_59 : i32
      %125 = arith.addi %0, %124 : i32
      %c0_60 = arith.constant 0 : index
      %126 = arith.index_cast %125 : i32 to index
      %c2_61 = arith.constant 2 : index
      %c16_62 = arith.constant 16 : index
      %127 = vector.load %arg2[%c0_60, %126, %c2_61, %c16_62] : memref<1x16x16x64xf32, #tpu.memory_space<vmem>>, vector<1x8x12x48xf32>
      %128 = vector.shape_cast %127 : vector<1x8x12x48xf32> to vector<8x12x48xf32>
      %129 = vector.extract_strided_slice %68 {offsets = [5, 0], sizes = [1, 48], strides = [1, 1]} : vector<9x48xf32> to vector<1x48xf32>
      %130 = vector.shape_cast %129 : vector<1x48xf32> to vector<48xf32>
      %131 = vector.shape_cast %130 : vector<48xf32> to vector<1x1x48xf32>
      %132 = vector.broadcast %131 : vector<1x1x48xf32> to vector<8x12x48xf32>
      %133 = arith.mulf %128, %132 : vector<8x12x48xf32>
      %134 = arith.addf %123, %133 : vector<8x12x48xf32>
      %c2_i32_63 = arith.constant 2 : i32
      %135 = arith.muli %arg15, %c2_i32_63 : i32
      %136 = arith.addi %0, %135 : i32
      %c0_64 = arith.constant 0 : index
      %137 = arith.index_cast %136 : i32 to index
      %c4_65 = arith.constant 4 : index
      %c0_66 = arith.constant 0 : index
      %138 = vector.load %arg2[%c0_64, %137, %c4_65, %c0_66] : memref<1x16x16x64xf32, #tpu.memory_space<vmem>>, vector<1x8x12x48xf32>
      %139 = vector.shape_cast %138 : vector<1x8x12x48xf32> to vector<8x12x48xf32>
      %140 = vector.extract_strided_slice %68 {offsets = [6, 0], sizes = [1, 48], strides = [1, 1]} : vector<9x48xf32> to vector<1x48xf32>
      %141 = vector.shape_cast %140 : vector<1x48xf32> to vector<48xf32>
      %142 = vector.shape_cast %141 : vector<48xf32> to vector<1x1x48xf32>
      %143 = vector.broadcast %142 : vector<1x1x48xf32> to vector<8x12x48xf32>
      %144 = arith.mulf %139, %143 : vector<8x12x48xf32>
      %145 = arith.addf %134, %144 : vector<8x12x48xf32>
      %c2_i32_67 = arith.constant 2 : i32
      %146 = arith.muli %arg15, %c2_i32_67 : i32
      %147 = arith.addi %0, %146 : i32
      %c0_68 = arith.constant 0 : index
      %148 = arith.index_cast %147 : i32 to index
      %c4_69 = arith.constant 4 : index
      %c8_70 = arith.constant 8 : index
      %149 = vector.load %arg2[%c0_68, %148, %c4_69, %c8_70] : memref<1x16x16x64xf32, #tpu.memory_space<vmem>>, vector<1x8x12x48xf32>
      %150 = vector.shape_cast %149 : vector<1x8x12x48xf32> to vector<8x12x48xf32>
      %151 = vector.extract_strided_slice %68 {offsets = [7, 0], sizes = [1, 48], strides = [1, 1]} : vector<9x48xf32> to vector<1x48xf32>
      %152 = vector.shape_cast %151 : vector<1x48xf32> to vector<48xf32>
      %153 = vector.shape_cast %152 : vector<48xf32> to vector<1x1x48xf32>
      %154 = vector.broadcast %153 : vector<1x1x48xf32> to vector<8x12x48xf32>
      %155 = arith.mulf %150, %154 : vector<8x12x48xf32>
      %156 = arith.addf %145, %155 : vector<8x12x48xf32>
      %c2_i32_71 = arith.constant 2 : i32
      %157 = arith.muli %arg15, %c2_i32_71 : i32
      %158 = arith.addi %0, %157 : i32
      %c0_72 = arith.constant 0 : index
      %159 = arith.index_cast %158 : i32 to index
      %c4_73 = arith.constant 4 : index
      %c16_74 = arith.constant 16 : index
      %160 = vector.load %arg2[%c0_72, %159, %c4_73, %c16_74] : memref<1x16x16x64xf32, #tpu.memory_space<vmem>>, vector<1x8x12x48xf32>
      %161 = vector.shape_cast %160 : vector<1x8x12x48xf32> to vector<8x12x48xf32>
      %162 = vector.extract_strided_slice %68 {offsets = [8, 0], sizes = [1, 48], strides = [1, 1]} : vector<9x48xf32> to vector<1x48xf32>
      %163 = vector.shape_cast %162 : vector<1x48xf32> to vector<48xf32>
      %164 = vector.shape_cast %163 : vector<48xf32> to vector<1x1x48xf32>
      %165 = vector.broadcast %164 : vector<1x1x48xf32> to vector<8x12x48xf32>
      %166 = arith.mulf %161, %165 : vector<8x12x48xf32>
      %167 = arith.addf %156, %166 : vector<8x12x48xf32>
      scf.yield %167 : vector<8x12x48xf32>
    }
    %c3_i32_0 = arith.constant 3 : i32
    %c0 = arith.constant 0 : index
    %c0_1 = arith.constant 0 : index
    %4 = vector.load %arg4[%c0, %c0_1] : memref<1x48xf32, #tpu.memory_space<vmem>>, vector<1x48xf32>
    %5 = vector.shape_cast %4 : vector<1x48xf32> to vector<1x1x48xf32>
    %6 = vector.broadcast %5 : vector<1x1x48xf32> to vector<8x12x48xf32>
    %7 = arith.mulf %3, %6 : vector<8x12x48xf32>
    %c0_2 = arith.constant 0 : index
    %c0_3 = arith.constant 0 : index
    %8 = vector.load %arg5[%c0_2, %c0_3] : memref<1x48xf32, #tpu.memory_space<vmem>>, vector<1x48xf32>
    %9 = vector.shape_cast %8 : vector<1x48xf32> to vector<1x1x48xf32>
    %10 = vector.broadcast %9 : vector<1x1x48xf32> to vector<8x12x48xf32>
    %11 = arith.addf %7, %10 : vector<8x12x48xf32>
    %cst_4 = arith.constant 0.000000e+00 : f32
    %cst_5 = arith.constant 6.000000e+00 : f32
    %12 = vector.broadcast %cst_4 : f32 to vector<8x12x48xf32>
    %13 = arith.maximumf %12, %11 : vector<8x12x48xf32>
    %14 = vector.broadcast %cst_5 : f32 to vector<8x12x48xf32>
    %15 = arith.minimumf %14, %13 : vector<8x12x48xf32>
    %c0_6 = arith.constant 0 : index
    %c0_7 = arith.constant 0 : index
    %16 = vector.load %arg7[%c0_6, %c0_7] : memref<12x48xf32, #tpu.memory_space<vmem>>, vector<12x48xf32>
    %17 = vector.shape_cast %16 : vector<12x48xf32> to vector<1x12x48xf32>
    %18 = vector.broadcast %17 : vector<1x12x48xf32> to vector<8x12x48xf32>
    %19 = arith.mulf %15, %18 : vector<8x12x48xf32>
    %20 = tpu.iota {dimensions = array<i32: 0>} : vector<8x12x48xi32>
    %c2_i32 = arith.constant 2 : i32
    %21 = arith.subi %0, %c2_i32 : i32
    %22 = vector.broadcast %21 : i32 to vector<8x12x48xi32>
    %23 = arith.addi %20, %22 : vector<8x12x48xi32>
    %c0_i32_8 = arith.constant 0 : i32
    %24 = vector.broadcast %c0_i32_8 : i32 to vector<8x12x48xi32>
    %25 = arith.cmpi sge, %23, %24 : vector<8x12x48xi32>
    %c8_i32 = arith.constant 8 : i32
    %26 = vector.broadcast %c8_i32 : i32 to vector<8x12x48xi32>
    %27 = arith.cmpi slt, %23, %26 : vector<8x12x48xi32>
    %28 = arith.andi %25, %27 : vector<8x12x48xi1>
    %cst_9 = arith.constant 0.000000e+00 : f32
    %29 = vector.broadcast %cst_9 : f32 to vector<8x12x48xf32>
    %30 = arith.select %28, %19, %29 : vector<8x12x48xi1>, vector<8x12x48xf32>
    %31 = vector.shape_cast %30 : vector<8x12x48xf32> to vector<96x48xf32>
    %c0_10 = arith.constant 0 : index
    %c0_11 = arith.constant 0 : index
    %32 = vector.load %arg6[%c0_10, %c0_11] : memref<48x48xf32, #tpu.memory_space<vmem>>, vector<48x48xf32>
    %cst_12 = arith.constant dense<0.000000e+00> : vector<96x48xf32>
    %33 = tpu.matmul %31, %32, %cst_12 {dimension_numbers = #tpu.dot_dimension_numbers<[1], [0], [0], [1], [0, 0, 1, 1], [], []>} : vector<96x48xf32>, vector<48x48xf32>, vector<96x48xf32> -> vector<96x48xf32>
    %34 = vector.shape_cast %33 : vector<96x48xf32> to vector<8x12x48xf32>
    %c0_13 = arith.constant 0 : index
    %c0_14 = arith.constant 0 : index
    %c0_15 = arith.constant 0 : index
    %35 = vector.load %arg14[%c0_13, %c0_14, %c0_15] : memref<8x12x48xf32, #tpu.memory_space<vmem>>, vector<8x12x48xf32>
    tpu.vector_store %arg14[%c0_13, %c0_14, %c0_15], %34 {strides = array<i32>} : memref<8x12x48xf32, #tpu.memory_space<vmem>>, vector<8x12x48xf32>,
    %cst_16 = arith.constant 0.000000e+00 : f32
    %36 = vector.broadcast %cst_16 : f32 to vector<4x8x32xf32>
    %c0_i32_17 = arith.constant 0 : i32
    %c3_i32_18 = arith.constant 3 : i32
    %37 = arith.addi %c0_i32_17, %c3_i32_18 : i32
    %c1_i32_19 = arith.constant 1 : i32
    %38 = scf.for %arg15 = %c0_i32_17 to %37 step %c1_i32_19 iter_args(%arg16 = %36) -> (vector<4x8x32xf32>)  : i32 {
      %66 = arith.index_cast %arg15 : i32 to index
      %c0_39 = arith.constant 0 : index
      %c0_40 = arith.constant 0 : index
      %67 = vector.load %arg8[%66, %c0_39, %c0_40] : memref<3x9x32xf32, #tpu.memory_space<vmem>>, vector<1x9x32xf32>
      %68 = vector.shape_cast %67 : vector<1x9x32xf32> to vector<9x32xf32>
      %c2_i32_41 = arith.constant 2 : i32
      %69 = arith.muli %arg15, %c2_i32_41 : i32
      %70 = arith.index_cast %69 : i32 to index
      %c0_42 = arith.constant 0 : index
      %c0_43 = arith.constant 0 : index
      %71 = vector.load %arg14[%70, %c0_42, %c0_43] : memref<8x12x48xf32, #tpu.memory_space<vmem>>, vector<4x8x32xf32>
      %72 = vector.extract_strided_slice %68 {offsets = [0, 0], sizes = [1, 32], strides = [1, 1]} : vector<9x32xf32> to vector<1x32xf32>
      %73 = vector.shape_cast %72 : vector<1x32xf32> to vector<32xf32>
      %74 = vector.shape_cast %73 : vector<32xf32> to vector<1x1x32xf32>
      %75 = vector.broadcast %74 : vector<1x1x32xf32> to vector<4x8x32xf32>
      %76 = arith.mulf %71, %75 : vector<4x8x32xf32>
      %77 = arith.addf %arg16, %76 : vector<4x8x32xf32>
      %c2_i32_44 = arith.constant 2 : i32
      %78 = arith.muli %arg15, %c2_i32_44 : i32
      %79 = arith.index_cast %78 : i32 to index
      %c0_45 = arith.constant 0 : index
      %c8 = arith.constant 8 : index
      %80 = vector.load %arg14[%79, %c0_45, %c8] : memref<8x12x48xf32, #tpu.memory_space<vmem>>, vector<4x8x32xf32>
      %81 = vector.extract_strided_slice %68 {offsets = [1, 0], sizes = [1, 32], strides = [1, 1]} : vector<9x32xf32> to vector<1x32xf32>
      %82 = vector.shape_cast %81 : vector<1x32xf32> to vector<32xf32>
      %83 = vector.shape_cast %82 : vector<32xf32> to vector<1x1x32xf32>
      %84 = vector.broadcast %83 : vector<1x1x32xf32> to vector<4x8x32xf32>
      %85 = arith.mulf %80, %84 : vector<4x8x32xf32>
      %86 = arith.addf %77, %85 : vector<4x8x32xf32>
      %c2_i32_46 = arith.constant 2 : i32
      %87 = arith.muli %arg15, %c2_i32_46 : i32
      %88 = arith.index_cast %87 : i32 to index
      %c0_47 = arith.constant 0 : index
      %c16_48 = arith.constant 16 : index
      %89 = vector.load %arg14[%88, %c0_47, %c16_48] : memref<8x12x48xf32, #tpu.memory_space<vmem>>, vector<4x8x32xf32>
      %90 = vector.extract_strided_slice %68 {offsets = [2, 0], sizes = [1, 32], strides = [1, 1]} : vector<9x32xf32> to vector<1x32xf32>
      %91 = vector.shape_cast %90 : vector<1x32xf32> to vector<32xf32>
      %92 = vector.shape_cast %91 : vector<32xf32> to vector<1x1x32xf32>
      %93 = vector.broadcast %92 : vector<1x1x32xf32> to vector<4x8x32xf32>
      %94 = arith.mulf %89, %93 : vector<4x8x32xf32>
      %95 = arith.addf %86, %94 : vector<4x8x32xf32>
      %c2_i32_49 = arith.constant 2 : i32
      %96 = arith.muli %arg15, %c2_i32_49 : i32
      %97 = arith.index_cast %96 : i32 to index
      %c2 = arith.constant 2 : index
      %c0_50 = arith.constant 0 : index
      %98 = vector.load %arg14[%97, %c2, %c0_50] : memref<8x12x48xf32, #tpu.memory_space<vmem>>, vector<4x8x32xf32>
      %99 = vector.extract_strided_slice %68 {offsets = [3, 0], sizes = [1, 32], strides = [1, 1]} : vector<9x32xf32> to vector<1x32xf32>
      %100 = vector.shape_cast %99 : vector<1x32xf32> to vector<32xf32>
      %101 = vector.shape_cast %100 : vector<32xf32> to vector<1x1x32xf32>
      %102 = vector.broadcast %101 : vector<1x1x32xf32> to vector<4x8x32xf32>
      %103 = arith.mulf %98, %102 : vector<4x8x32xf32>
      %104 = arith.addf %95, %103 : vector<4x8x32xf32>
      %c2_i32_51 = arith.constant 2 : i32
      %105 = arith.muli %arg15, %c2_i32_51 : i32
      %106 = arith.index_cast %105 : i32 to index
      %c2_52 = arith.constant 2 : index
      %c8_53 = arith.constant 8 : index
      %107 = vector.load %arg14[%106, %c2_52, %c8_53] : memref<8x12x48xf32, #tpu.memory_space<vmem>>, vector<4x8x32xf32>
      %108 = vector.extract_strided_slice %68 {offsets = [4, 0], sizes = [1, 32], strides = [1, 1]} : vector<9x32xf32> to vector<1x32xf32>
      %109 = vector.shape_cast %108 : vector<1x32xf32> to vector<32xf32>
      %110 = vector.shape_cast %109 : vector<32xf32> to vector<1x1x32xf32>
      %111 = vector.broadcast %110 : vector<1x1x32xf32> to vector<4x8x32xf32>
      %112 = arith.mulf %107, %111 : vector<4x8x32xf32>
      %113 = arith.addf %104, %112 : vector<4x8x32xf32>
      %c2_i32_54 = arith.constant 2 : i32
      %114 = arith.muli %arg15, %c2_i32_54 : i32
      %115 = arith.index_cast %114 : i32 to index
      %c2_55 = arith.constant 2 : index
      %c16_56 = arith.constant 16 : index
      %116 = vector.load %arg14[%115, %c2_55, %c16_56] : memref<8x12x48xf32, #tpu.memory_space<vmem>>, vector<4x8x32xf32>
      %117 = vector.extract_strided_slice %68 {offsets = [5, 0], sizes = [1, 32], strides = [1, 1]} : vector<9x32xf32> to vector<1x32xf32>
      %118 = vector.shape_cast %117 : vector<1x32xf32> to vector<32xf32>
      %119 = vector.shape_cast %118 : vector<32xf32> to vector<1x1x32xf32>
      %120 = vector.broadcast %119 : vector<1x1x32xf32> to vector<4x8x32xf32>
      %121 = arith.mulf %116, %120 : vector<4x8x32xf32>
      %122 = arith.addf %113, %121 : vector<4x8x32xf32>
      %c2_i32_57 = arith.constant 2 : i32
      %123 = arith.muli %arg15, %c2_i32_57 : i32
      %124 = arith.index_cast %123 : i32 to index
      %c4_58 = arith.constant 4 : index
      %c0_59 = arith.constant 0 : index
      %125 = vector.load %arg14[%124, %c4_58, %c0_59] : memref<8x12x48xf32, #tpu.memory_space<vmem>>, vector<4x8x32xf32>
      %126 = vector.extract_strided_slice %68 {offsets = [6, 0], sizes = [1, 32], strides = [1, 1]} : vector<9x32xf32> to vector<1x32xf32>
      %127 = vector.shape_cast %126 : vector<1x32xf32> to vector<32xf32>
      %128 = vector.shape_cast %127 : vector<32xf32> to vector<1x1x32xf32>
      %129 = vector.broadcast %128 : vector<1x1x32xf32> to vector<4x8x32xf32>
      %130 = arith.mulf %125, %129 : vector<4x8x32xf32>
      %131 = arith.addf %122, %130 : vector<4x8x32xf32>
      %c2_i32_60 = arith.constant 2 : i32
      %132 = arith.muli %arg15, %c2_i32_60 : i32
      %133 = arith.index_cast %132 : i32 to index
      %c4_61 = arith.constant 4 : index
      %c8_62 = arith.constant 8 : index
      %134 = vector.load %arg14[%133, %c4_61, %c8_62] : memref<8x12x48xf32, #tpu.memory_space<vmem>>, vector<4x8x32xf32>
      %135 = vector.extract_strided_slice %68 {offsets = [7, 0], sizes = [1, 32], strides = [1, 1]} : vector<9x32xf32> to vector<1x32xf32>
      %136 = vector.shape_cast %135 : vector<1x32xf32> to vector<32xf32>
      %137 = vector.shape_cast %136 : vector<32xf32> to vector<1x1x32xf32>
      %138 = vector.broadcast %137 : vector<1x1x32xf32> to vector<4x8x32xf32>
      %139 = arith.mulf %134, %138 : vector<4x8x32xf32>
      %140 = arith.addf %131, %139 : vector<4x8x32xf32>
      %c2_i32_63 = arith.constant 2 : i32
      %141 = arith.muli %arg15, %c2_i32_63 : i32
      %142 = arith.index_cast %141 : i32 to index
      %c4_64 = arith.constant 4 : index
      %c16_65 = arith.constant 16 : index
      %143 = vector.load %arg14[%142, %c4_64, %c16_65] : memref<8x12x48xf32, #tpu.memory_space<vmem>>, vector<4x8x32xf32>
      %144 = vector.extract_strided_slice %68 {offsets = [8, 0], sizes = [1, 32], strides = [1, 1]} : vector<9x32xf32> to vector<1x32xf32>
      %145 = vector.shape_cast %144 : vector<1x32xf32> to vector<32xf32>
      %146 = vector.shape_cast %145 : vector<32xf32> to vector<1x1x32xf32>
      %147 = vector.broadcast %146 : vector<1x1x32xf32> to vector<4x8x32xf32>
      %148 = arith.mulf %143, %147 : vector<4x8x32xf32>
      %149 = arith.addf %140, %148 : vector<4x8x32xf32>
      scf.yield %149 : vector<4x8x32xf32>
    }
    %c3_i32_20 = arith.constant 3 : i32
    %c0_21 = arith.constant 0 : index
    %c0_22 = arith.constant 0 : index
    %39 = vector.load %arg9[%c0_21, %c0_22] : memref<1x32xf32, #tpu.memory_space<vmem>>, vector<1x32xf32>
    %40 = vector.shape_cast %39 : vector<1x32xf32> to vector<1x1x32xf32>
    %41 = vector.broadcast %40 : vector<1x1x32xf32> to vector<4x8x32xf32>
    %42 = arith.mulf %38, %41 : vector<4x8x32xf32>
    %c0_23 = arith.constant 0 : index
    %c0_24 = arith.constant 0 : index
    %43 = vector.load %arg10[%c0_23, %c0_24] : memref<1x32xf32, #tpu.memory_space<vmem>>, vector<1x32xf32>
    %44 = vector.shape_cast %43 : vector<1x32xf32> to vector<1x1x32xf32>
    %45 = vector.broadcast %44 : vector<1x1x32xf32> to vector<4x8x32xf32>
    %46 = arith.addf %42, %45 : vector<4x8x32xf32>
    %cst_25 = arith.constant 0.000000e+00 : f32
    %cst_26 = arith.constant 6.000000e+00 : f32
    %47 = vector.broadcast %cst_25 : f32 to vector<4x8x32xf32>
    %48 = arith.maximumf %47, %46 : vector<4x8x32xf32>
    %49 = vector.broadcast %cst_26 : f32 to vector<4x8x32xf32>
    %50 = arith.minimumf %49, %48 : vector<4x8x32xf32>
    %51 = vector.shape_cast %50 : vector<4x8x32xf32> to vector<32x32xf32>
    %c0_27 = arith.constant 0 : index
    %c0_28 = arith.constant 0 : index
    %52 = vector.load %arg11[%c0_27, %c0_28] : memref<32x64xf32, #tpu.memory_space<vmem>>, vector<32x64xf32>
    %cst_29 = arith.constant dense<0.000000e+00> : vector<32x64xf32>
    %53 = tpu.matmul %51, %52, %cst_29 {dimension_numbers = #tpu.dot_dimension_numbers<[1], [0], [0], [1], [0, 0, 1, 1], [], []>} : vector<32x32xf32>, vector<32x64xf32>, vector<32x64xf32> -> vector<32x64xf32>
    %c4_i32_30 = arith.constant 4 : i32
    %54 = arith.addi %0, %c4_i32_30 : i32
    %c0_31 = arith.constant 0 : index
    %55 = arith.index_cast %54 : i32 to index
    %c4 = arith.constant 4 : index
    %c16 = arith.constant 16 : index
    %56 = vector.load %arg2[%c0_31, %55, %c4, %c16] : memref<1x16x16x64xf32, #tpu.memory_space<vmem>>, vector<1x4x8x32xf32>
    %57 = vector.shape_cast %56 : vector<1x4x8x32xf32> to vector<4x8x32xf32>
    %58 = vector.shape_cast %57 : vector<4x8x32xf32> to vector<32x32xf32>
    %c0_32 = arith.constant 0 : index
    %c0_33 = arith.constant 0 : index
    %59 = vector.load %arg12[%c0_32, %c0_33] : memref<32x64xf32, #tpu.memory_space<vmem>>, vector<32x64xf32>
    %cst_34 = arith.constant dense<0.000000e+00> : vector<32x64xf32>
    %60 = tpu.matmul %58, %59, %cst_34 {dimension_numbers = #tpu.dot_dimension_numbers<[1], [0], [0], [1], [0, 0, 1, 1], [], []>} : vector<32x32xf32>, vector<32x64xf32>, vector<32x64xf32> -> vector<32x64xf32>
    %61 = arith.addf %53, %60 : vector<32x64xf32>
    %62 = vector.shape_cast %61 : vector<32x64xf32> to vector<4x8x64xf32>
    %c0_35 = arith.constant 0 : index
    %c0_36 = arith.constant 0 : index
    %c0_37 = arith.constant 0 : index
    %c0_38 = arith.constant 0 : index
    %63 = vector.load %arg13[%c0_35, %c0_36, %c0_37, %c0_38] : memref<1x4x8x64xf32, #tpu.memory_space<vmem>>, vector<1x4x8x64xf32>
    %64 = vector.shape_cast %63 : vector<1x4x8x64xf32> to vector<4x8x64xf32>
    %65 = vector.shape_cast %62 : vector<4x8x64xf32> to vector<1x4x8x64xf32>
    tpu.vector_store %arg13[%c0_35, %c0_36, %c0_37, %c0_38], %65 {strides = array<i32>} : memref<1x4x8x64xf32, #tpu.memory_space<vmem>>, vector<1x4x8x64xf32>,
    return
  }
  func.func @transform_0(%arg0: i32, %arg1: i32) -> (i32, i32, i32, i32) {
    %c0_i32 = arith.constant 0 : i32
    %c0_i32_0 = arith.constant 0 : i32
    %c0_i32_1 = arith.constant 0 : i32
    %c0_i32_2 = arith.constant 0 : i32
    return %arg0, %c0_i32, %c0_i32_0, %c0_i32_1 : i32, i32, i32, i32
  }
  func.func @transform_1(%arg0: i32, %arg1: i32) -> (i32, i32, i32) {
    %c0_i32 = arith.constant 0 : i32
    %c0_i32_0 = arith.constant 0 : i32
    %c0_i32_1 = arith.constant 0 : i32
    %c0_i32_2 = arith.constant 0 : i32
    return %c0_i32, %c0_i32_0, %c0_i32_1 : i32, i32, i32
  }
  func.func @transform_2(%arg0: i32, %arg1: i32) -> (i32, i32) {
    %c0_i32 = arith.constant 0 : i32
    %c0_i32_0 = arith.constant 0 : i32
    %c0_i32_1 = arith.constant 0 : i32
    return %c0_i32, %c0_i32_0 : i32, i32
  }
  func.func @transform_3(%arg0: i32, %arg1: i32) -> (i32, i32) {
    %c0_i32 = arith.constant 0 : i32
    %c0_i32_0 = arith.constant 0 : i32
    %c0_i32_1 = arith.constant 0 : i32
    return %c0_i32, %c0_i32_0 : i32, i32
  }
  func.func @transform_4(%arg0: i32, %arg1: i32) -> (i32, i32) {
    %c0_i32 = arith.constant 0 : i32
    %c0_i32_0 = arith.constant 0 : i32
    %c0_i32_1 = arith.constant 0 : i32
    return %c0_i32, %c0_i32_0 : i32, i32
  }
  func.func @transform_5(%arg0: i32, %arg1: i32) -> (i32, i32) {
    %c0_i32 = arith.constant 0 : i32
    %c0_i32_0 = arith.constant 0 : i32
    %c0_i32_1 = arith.constant 0 : i32
    return %c0_i32, %c0_i32_0 : i32, i32
  }
  func.func @transform_6(%arg0: i32, %arg1: i32) -> (i32, i32, i32) {
    %c0_i32 = arith.constant 0 : i32
    %c0_i32_0 = arith.constant 0 : i32
    %c0_i32_1 = arith.constant 0 : i32
    %c0_i32_2 = arith.constant 0 : i32
    return %c0_i32, %c0_i32_0, %c0_i32_1 : i32, i32, i32
  }
  func.func @transform_7(%arg0: i32, %arg1: i32) -> (i32, i32) {
    %c0_i32 = arith.constant 0 : i32
    %c0_i32_0 = arith.constant 0 : i32
    %c0_i32_1 = arith.constant 0 : i32
    return %c0_i32, %c0_i32_0 : i32, i32
  }
  func.func @transform_8(%arg0: i32, %arg1: i32) -> (i32, i32) {
    %c0_i32 = arith.constant 0 : i32
    %c0_i32_0 = arith.constant 0 : i32
    %c0_i32_1 = arith.constant 0 : i32
    return %c0_i32, %c0_i32_0 : i32, i32
  }
  func.func @transform_9(%arg0: i32, %arg1: i32) -> (i32, i32) {
    %c0_i32 = arith.constant 0 : i32
    %c0_i32_0 = arith.constant 0 : i32
    %c0_i32_1 = arith.constant 0 : i32
    return %c0_i32, %c0_i32_0 : i32, i32
  }
  func.func @transform_10(%arg0: i32, %arg1: i32) -> (i32, i32) {
    %c0_i32 = arith.constant 0 : i32
    %c0_i32_0 = arith.constant 0 : i32
    %c0_i32_1 = arith.constant 0 : i32
    return %c0_i32, %c0_i32_0 : i32, i32
  }
  func.func @transform_11(%arg0: i32, %arg1: i32) -> (i32, i32, i32, i32) {
    %c0_i32 = arith.constant 0 : i32
    %c0_i32_0 = arith.constant 0 : i32
    %c0_i32_1 = arith.constant 0 : i32
    return %arg0, %arg1, %c0_i32, %c0_i32_0 : i32, i32, i32, i32
  }
}

</mosaic_0001>

<bundles_post_ra>
// kernel: tpu_custom_call.1
= control target key start
LH: loop header
LB: loop body
LE: loop exit
PB: predicated region body
PF: predicated region fallthrough
CT: control target
= control target key end

     0   :  { %s4313_s0 = inlined_call_operand.hbm [shape: f32[2,16,16,64], index: 0, kind: input, shape index: {}]   ;;  %s4314_s1 = inlined_call_operand.vmem [shape: f32[3,9,48], index: 1, kind: input, shape index: {}]   ;;  %s4315_s2 = inlined_call_operand.vmem [shape: f32[1,48], index: 2, kind: input, shape index: {}]   ;;  %s4316_s3 = inlined_call_operand.vmem [shape: f32[1,48], index: 3, kind: input, shape index: {}]   ;;  %s4317_s4 = inlined_call_operand.vmem [shape: f32[48,48], index: 4, kind: input, shape index: {}]   ;;  %s4318_s5 = inlined_call_operand.vmem [shape: f32[12,48], index: 5, kind: input, shape index: {}]   ;;  %s4319_s6 = inlined_call_operand.vmem [shape: f32[3,9,32], index: 6, kind: input, shape index: {}]   ;;  %s4320_s7 = inlined_call_operand.vmem [shape: f32[1,32], index: 7, kind: input, shape index: {}]   ;;  %s4321_s8 = inlined_call_operand.vmem [shape: f32[1,32], index: 8, kind: input, shape index: {}]   ;;  %s4322_s9 = inlined_call_operand.vmem [shape: f32[32,64], index: 9, kind: input, shape index: {}]   ;;  %s4323_s10 = inlined_call_operand.vmem [shape: f32[32,64], index: 10, kind: input, shape index: {}]   ;;  %s4324_s11 = inlined_call_operand.hbm [shape: f32[2,8,8,64], index: 11, kind: output, shape index: {}]  }
   0x1   :  { %4344 = sst [smem:[#allocation22_spill]] %s4313_s0 }
   0x2   :  { %4345 = sst [smem:[#allocation23_spill]] %s4320_s7 }
   0x3   :  { %4346 = sst [smem:[#allocation24_spill]] %s4321_s8 }
   0x4   :  { %4347 = sst [smem:[#allocation25_spill]] %s4323_s10 }
   0x5   :  { %4348 = sst [smem:[#allocation26_spill]] %s4324_s11 }
   0x6   :  { %16 = vsyncpa [#allocation4], 0 }
   0x7   :  { %18 = vsyncpa [#allocation4 + $0x1], 0 }
   0x8   :  { %19 = vsyncpa [#allocation5], 0 }
   0x9   :  { %21 = vsyncpa [#allocation5 + $0x1], 0  ;;  %s2924_s17 = smov 0   ;;  %s2926_s18 = smov 0  }
   0xa   :  { %s2928_s19 = smov 0   ;;  %s2930_s20 = smov 0  }
   0xb   :  { %s2932_s21 = smov 0   ;;  %s2934_s22 = smov 0  }
   0xc   :  { %s2936_s23 = smov 0   ;;  %s2938_s24 = smov 0  }
   0xd   :  { %s2940_s25 = smov 0   ;;  %s2942_s26 = smov 0  }
   0xe   :  { %s2944_s27 = smov 0  }
   0xf LB: > { %4349 = sst [smem:[#allocation9_spill]] %s2749_s24  ;;  %s2153_s28 = sadd.s32 4294967295, %s2761_s27   ;;  %s2761_s27 = sphi %s2944_s27, %s27_s27   ;;  %s2757_s26 = sphi %s2942_s26, %s4431_s26   ;;  %s2753_s25 = sphi %s2940_s25, %s4430_s25   ;;  %s2749_s24 = sphi %s2938_s24, %s4429_s24   ;;  %s2745_s23 = sphi %s2936_s23, %s4428_s23   ;;  %s2741_s22 = sphi %s2934_s22, %s4437_s22   ;;  %s2737_s21 = sphi %s2932_s21, %s4436_s21   ;;  %s2733_s20 = sphi %s2930_s20, %s4435_s20   ;;  %s2729_s19 = sphi %s2928_s19, %s4434_s19   ;;  %s2725_s18 = sphi %s2926_s18, %s4433_s18   ;;  %s2721_s17 = sphi %s2924_s17, %s4432_s17  }
  0x10   : > { %4350 = sst [smem:[#allocation10_spill]] %s2753_s25  ;;  %s2154_s29 = sadd.s32 4294967294, %s2761_s27  }
  0x11   : > { %4351 = sst [smem:[#allocation11_spill]] %s2757_s26  ;;  %s36_s30 = sadd.s32 1, %s2753_s25 }
  0x12   : > { %s39_s12 = sadd.s32 1, %s2757_s26  ;;  %p37_p0 = scmp.ge.s32.totalorder %s36_s30, 2 }
  0x13   : > { %s46_s13 = sadd.s32 1, %s2741_s22  ;;  %p53_p1 = scmp.ne.s32.totalorder %s2741_s22, %s2737_s21 }
  0x14   : > { %p54_p2 = scmp.eq.s32.totalorder %s2761_s27, 0  ;;  %s4439_s30 = smov (%p37_p0, %s36_s30), 0 }
  0x15   : > { %4352 = sst [smem:[#allocation12_spill]] %s4439_s30  ;;  %s4441_s12 = smov (!%p37_p0, %s39_s12), %s2757_s26 }
  0x16   : > { %p2988_p3 = por %p54_p2, %p53_p1  ;;  %p59_p4 = scmp.ne.s32.totalorder %s2737_s21, %s2733_s20 }
  0x17   : > { %p41_p5 = scmp.ge.s32.totalorder %s4441_s12, 2  ;;  %p60_p6 = scmp.eq.s32.totalorder %s2153_s28, 0 }
  0x18   : > { %s280_s15 = ssub.s32 %s2753_s25, %s4439_s30  ;;  %s284_s16 = sadd.s32 1, %s2729_s19 }
  0x19   : > { %s4443_s12 = smov (%p41_p5, %s4441_s12), 0  ;;  %p2998_p7 = por %p60_p6, %p59_p4 }
  0x1a   : > { %4354 = sst [smem:[#allocation13_spill]] %s4443_s12  ;;  %p294_p8 = scmp.ne.s32.totalorder %s2729_s19, %s2725_s18 }
  0x1b   : > { %s43_s24 = ssub.s32 %s2757_s26, %s4443_s12  ;;  %p295_p9 = scmp.eq.s32.totalorder %s2153_s28, 3 }
  0x1c   : > { %p44_p10 = scmp.eq.s32.totalorder %s43_s24, 0  ;;  %s281_s20 = sor.u32 %s280_s15, %s43_s24 }
  0x1d   : > { %p282_p11 = scmp.eq.s32.totalorder %s281_s20, 0  ;;  %p3006_p12 = por %p295_p9, %p294_p8 }
  0x1e   : > { %s3011_s30 = scalar_select %p44_p10, %s2741_s22, %s46_s13  }
  0x1f   : > { %s4356_s8 = scalar_select %p3006_p12, 1, 0 }
  0x20   : > { %4358 = sst [smem:[#allocation15_spill]] %s3011_s30  ;;  %p300_p13 = scmp.ne.s32.totalorder %s2725_s18, %s2721_s17 }
  0x21   : > { %4357 = sst [smem:[#allocation14_spill]] %s4356_s8  ;;  %p301_p0 = scmp.eq.s32.totalorder %s2154_s29, 3 }
  0x22   : > { %s3014_s25 = scalar_select %p282_p11, %s2729_s19, %s284_s16  }
  0x23   : > { %p2236_p1 = scmp.lt.s32.totalorder %s2761_s27, 4  ;;  %p3019_p2 = por %p301_p0, %p300_p13 }
  0x24   : > { %4359 = sst [smem:[#allocation16_spill]] %s3014_s25  ;;  %s351_s24 = sand.u32 1, %s2741_s22  }
  0x25   : > { %s2157_s28 = sshll.u32 %s351_s24, 8  ;;  %s2203_s15 = sshll.u32 %s2757_s26, 8 }
  0x26   : > { %s4361_s0 = sld [smem:[#allocation22_spill]]  ;;  %s355_s13 = scalar_lea.vmem [#allocation3], %s2157_s28 }
  0x27   : > { %s363_s30 = sshll.u32 %s355_s13, 4  ;;  %p2229_p4 = pnand %p2236_p1, %p2988_p3  ;;  %s364_s30 = int_to_ptr.vmem [resolvable:$true] %s363_s30 }
  0x28   : > { %p2160_p5 = scmp.ge.s32.totalorder %s2761_s27, 1  ;;  %s352_s29 = scalar_lea.sflag [#allocation4], %s351_s24 }
  0x29   : > { %s2851_s16 = smov 128   ;;  %s2852_s25 = smov 8  }
  0x2a   : > { %p371_p6 = scmp.lt.s32.totalorder %s2761_s27, 5 }
  0x2c   : > { %s360_s8 = scalar_lea.hbm %s4361_s0, %s2203_s15  ;;  %p372_p8 = pnand %p2160_p5, %p371_p6 }
  0x2d   : > { %s361_s10 = sshll.u32 %s360_s8, 4  ;;  %s377_s26 = sand.u32 (!%p372_p8), 1, %s2737_s21   ;;  %s362_s10 = int_to_ptr.hbm [resolvable:$true] %s361_s10 }
  0x2e   : > { %2231 = dma.hbm_to_vmem [thread:$0]  (!%p2229_p4), %s362_s10, 4096, %s364_s30, %s352_s29, %s2851_s16, %s2851_s16, %s2852_s25  }
  0x2f   : > { %375 = sbr.rel (%p372_p8) target bundleno = 1583 (0x62f), region = 64  ;;  %s3033_s12 = sshll.u32 (!%p372_p8), %s377_s26, 8 }
  0x30   : > { %s378_s28 = scalar_lea.sflag (!%p372_p8), [#allocation4], %s377_s26  ;;  %s381_s8 = scalar_lea.vmem (!%p372_p8), [#allocation3], %s3033_s12 }
  0x34   : > { %2712 = dma.done.wait (%p2998_p7), %s378_s28, 4096  }
  0x35   : > { %2714 = vsyncadd (%p2998_p7), %s378_s28, 4294963200  ;;  %s4343_s10 = sand.u32 1, %s2725_s18   ;;  %s3042_s25 = sshll.u32 %s2745_s23, 2  ;;  %v3048_v0 = vmov 0.0   ;;  %v3050_v1 = vmov 0.0   ;;  %v3052_v2 = vmov 0.0  }
  0x36   : > { %s2162_s30 = sshll.u32 %s4343_s10, 5  ;;  %v3054_v3 = vmov 0.0   ;;  %v3056_v4 = vmov 0.0   ;;  %v3058_v5 = vmov 0.0   ;;  %v3060_v6 = vmov 0.0   ;;  %s3080_s11 = smov 0  }
  0x37   : > { %s3046_s14 = scalar_lea.vmem [#allocation6], %s2162_s30  ;;  %v3062_v7 = vmov 0.0   ;;  %v3064_v8 = vmov 0.0   ;;  %v3066_v9 = vmov 0.0   ;;  %v3068_v10 = vmov 0.0  }
  0x38   : > { %v3070_v11 = vmov 0.0   ;;  %v3072_v12 = vmov 0.0   ;;  %v3074_v13 = vmov 0.0   ;;  %v3076_v14 = vmov 0.0  }
  0x39   : > { %v3078_v15 = vmov 0.0  }
  0x3a LB: >> { %s2164_s26 = sshll.u32 %s2829_s11, 4  ;;  %s2853_s13 = smov 8   ;;  %s2829_s11 = sphi %s3080_s11, %s428_s11   ;;  %v2825_v15 = vphi %v3078_v15, %v4400_v15   ;;  %v2821_v14 = vphi %v3076_v14, %v4399_v14   ;;  %v2817_v13 = vphi %v3074_v13, %v4398_v13   ;;  %v2813_v12 = vphi %v3072_v12, %v4397_v12   ;;  %v2809_v11 = vphi %v3070_v11, %v4396_v11   ;;  %v2805_v10 = vphi %v3068_v10, %v4395_v10   ;;  %v2801_v9 = vphi %v3066_v9, %v4394_v9   ;;  %v2797_v8 = vphi %v3064_v8, %v4393_v8   ;;  %v2793_v7 = vphi %v3062_v7, %v4392_v7   ;;  %v2789_v6 = vphi %v3060_v6, %v4391_v6   ;;  %v2785_v5 = vphi %v3058_v5, %v4390_v5   ;;  %v2781_v4 = vphi %v3056_v4, %v4389_v4   ;;  %v2777_v3 = vphi %v3054_v3, %v4388_v3   ;;  %v2773_v2 = vphi %v3052_v2, %v4387_v2   ;;  %v2769_v1 = vphi %v3050_v1, %v4386_v1   ;;  %v2765_v0 = vphi %v3048_v0, %v4385_v0  }
  0x3b   : >> { %s3137_s20 = scalar_lea.vmem %s4314_s1, %s2164_s26  ;;  %s2854_s29 = smov 16  }
  0x3c   : >> { %v3140_v16 = vld [vmem:[%s3137_s20] sm:$0xff]  ;;  %s2165_s16 = sshll.u32 %s2829_s11, 1  ;;  %s2855_s24 = smov 120  }
  0x3d   : >> { %v502_v17 = vperm.slane %v3140_v16, 1  ;;  %v603_v18 = vperm.slane %v3140_v16, 2  ;;  %v753_v19 = vperm.slane %v3140_v16, 4  ;;  %s450_s28 = sadd.s32 %s2165_s16, %s3042_s25  ;;  %s2856_s15 = smov 112  }
  0x3e   : >> { %s2166_s30 = sshll.u32 %s450_s28, 4  ;;  %s428_s11 = sadd.s32 1, %s2829_s11  }
  0x3f   : >> { %504 = vrot.lane.b32.xlu0 %v502_v17, %s2853_s13  ;;  %605 = vrot.lane.b32.xlu2 %v603_v18, %s2854_s29  ;;  %s3152_s26 = scalar_lea.vmem %s381_s8, %s2166_s30 [#allocation3]  ;;  %p3788_p3 = scmp.ge.s32.totalorder %s428_s11, 3  }
  0x40   : >> { %755 = vrot.lane.b32.xlu1 %v753_v19, %s2853_s13  ;;  %v3155_v20 = vld [vmem:[%s3152_s26 + $0x18] sm:$0xf]  ;;  %v3158_v21 = vld [vmem:[%s3152_s26 + $0x8] sm:$0xf]  ;;  %v3161_v22 = vld [vmem:[%s3152_s26] sm:$0xff]  ;;  %s2167_s30 = sadd.s32 (%p3788_p3), 4294967294, %s3042_s25 }
  0x41   : >> { %v3170_v27 = vld [vmem:[%s3152_s26 + $0x20] sm:$0xff]  ;;  %v3173_v28 = vld [vmem:[%s3152_s26 + $0x10] sm:$0xff]  ;;  %v3176_v29 = vld [vmem:[%s3152_s26 + $0x28] sm:$0xf]  ;;  %vm1418_vm6 = vcmask (%p3788_p3), 392192  }
  0x42   : >> { %v3185_v33 = vld [vmem:[%s3152_s26 + $0x38] sm:$0xf]  ;;  %v3188_v34 = vld [vmem:[%s3152_s26 + $0x30] sm:$0xff]  ;;  %v3191_v35 = vld [vmem:[%s3152_s26 + $0x40] sm:$0xff] }
  0x43   : >> { %v3200_v39 = vld [vmem:[%s3152_s26 + $0x50] sm:$0xff]  ;;  %v3203_v40 = vld [vmem:[%s3152_s26 + $0x48] sm:$0xf]  ;;  %v3206_v41 = vld [vmem:[%s3152_s26 + $0x58] sm:$0xf] }
  0x44   : >> { %v3215_v45 = vld [vmem:[%s3152_s26 + $0x68] sm:$0xf]  ;;  %v3218_v46 = vld [vmem:[%s3152_s26 + $0x60] sm:$0xff]  ;;  %v3221_v47 = vld [vmem:[%s3152_s26 + $0x70] sm:$0xff] }
  0x45   : >> { %v3230_v52 = vld [vmem:[%s3152_s26 + $0x78] sm:$0xf] }
  0x99   : >> { %v606_v51 = vpop.permute.xlu2 %605 }
  0x9a   : >> { %v610_v53 = vmul.f32 %v606_v51, %v3173_v28  ;;  %v608_v54 = vmul.f32 %v606_v51, %v3161_v22  ;;  %v613_v56 = vmul.f32 %v606_v51, %v3176_v29  ;;  %v609_v57 = vmul.f32 %v606_v51, %v3158_v21 }
  0x9b   : >> { %v611_v58 = vmul.f32 %v606_v51, %v3155_v20  ;;  %v616_v59 = vmul.f32 %v606_v51, %v3191_v35  ;;  %v612_v60 = vmul.f32 %v606_v51, %v3170_v27  ;;  %v614_v61 = vmul.f32 %v606_v51, %v3188_v34 }
  0x9c   : >> { %v619_v62 = vmul.f32 %v606_v51, %v3206_v41  ;;  %v615_v63 = vmul.f32 %v606_v51, %v3185_v33  ;;  %v617_v17 = vmul.f32 %v606_v51, %v3203_v40  ;;  %v622_v18 = vmul.f32 %v606_v51, %v3221_v47 }
  0x9d   : >> { %v618_v19 = vmul.f32 %v606_v51, %v3200_v39 }
  0xb1   : >> { %v505_v23 = vpop.permute.xlu0 %504 }
  0xb2   : >> { %v510_v24 = vmul.f32 %v505_v23, %v3155_v20  ;;  %v508_v25 = vmul.f32 %v505_v23, %v3158_v21  ;;  %v507_v26 = vmul.f32 %v505_v23, %v3161_v22  ;;  %v511_v30 = vmul.f32 %v505_v23, %v3170_v27 }
  0xb3   : >> { %v509_v31 = vmul.f32 %v505_v23, %v3173_v28  ;;  %v512_v32 = vmul.f32 %v505_v23, %v3176_v29  ;;  %v514_v36 = vmul.f32 %v505_v23, %v3185_v33  ;;  %v513_v37 = vmul.f32 %v505_v23, %v3188_v34 }
  0xb4   : >> { %545 = vrot.lane.b32.xlu2 %v510_v24, %s2855_s24  ;;  %541 = vrot.lane.b32.xlu1 %v508_v25, %s2855_s24  ;;  %v515_v38 = vmul.f32 %v505_v23, %v3191_v35  ;;  %v517_v42 = vmul.f32 %v505_v23, %v3200_v39  ;;  %v516_v43 = vmul.f32 %v505_v23, %v3203_v40  ;;  %v756_v24 = vpop.permute.xlu1 %755  ;;  %v3263_v25 = vld [vmem:[%s3152_s26 + $0x2] sm:$0xff] }
  0xb5   : >> { %539 = vrot.lane.b32.xlu0 %v507_v26, %s2855_s24  ;;  %v518_v44 = vmul.f32 %v505_v23, %v3206_v41  ;;  %v520_v48 = vmul.f32 %v505_v23, %v3215_v45  ;;  %v519_v49 = vmul.f32 %v505_v23, %v3218_v46  ;;  %v521_v50 = vmul.f32 %v505_v23, %v3221_v47 }
  0xb6   : >> { %v522_v55 = vmul.f32 %v505_v23, %v3230_v52  ;;  %v620_v23 = vmul.f32 %v606_v51, %v3218_v46  ;;  %v758_v26 = vmul.f32 %v756_v24, %v3263_v25 }
  0xbc   : >> { %547 = vrot.lane.b32.xlu2 %v511_v30, %s2855_s24  ;;  %543 = vrot.lane.b32.xlu1 %v509_v31, %s2855_s24  ;;  %v621_v30 = vmul.f32 %v606_v51, %v3215_v45  ;;  %v623_v31 = vmul.f32 %v606_v51, %v3230_v52 }
  0xbd   : >> { %549 = vrot.lane.b32.xlu0 %v512_v32, %s2855_s24  ;;  %v3269_v32 = vperm.slane %v3140_v16, 0 }
  0xc4   : >> { %553 = vrot.lane.b32.xlu2 %v514_v36, %s2855_s24  ;;  %551 = vrot.lane.b32.xlu1 %v513_v37, %s2855_s24  ;;  %v3275_v36 = vld [vmem:[%s3152_s26 + $0x1a] sm:$0xf]  ;;  %v3278_v37 = vld [vmem:[%s3152_s26 + $0x12] sm:$0xff] }
  0xc5   : >> { %555 = vrot.lane.b32.xlu0 %v515_v38, %s2855_s24  ;;  %v3281_v38 = vld [vmem:[%s3152_s26 + $0xa] sm:$0xf] }
  0xcc   : >> { %559 = vrot.lane.b32.xlu2 %v517_v42, %s2855_s24  ;;  %557 = vrot.lane.b32.xlu1 %v516_v43, %s2855_s24  ;;  %v473_v42 = vmul.f32 %v3269_v32, %v3155_v20  ;;  %v761_v43 = vmul.f32 %v756_v24, %v3275_v36  ;;  %v3295_v20 = vld [vmem:[%s3152_s26 + $0x32] sm:$0xff] }
  0xcd   : >> { %561 = vrot.lane.b32.xlu0 %v518_v44, %s2855_s24  ;;  %v760_v44 = vmul.f32 %v756_v24, %v3278_v37 }
  0xd4   : >> { %565 = vrot.lane.b32.xlu2 %v520_v48, %s2855_s24  ;;  %563 = vrot.lane.b32.xlu1 %v519_v49, %s2855_s24  ;;  %v759_v48 = vmul.f32 %v756_v24, %v3281_v38  ;;  %v489_v49 = vadd.f32 %v2813_v12, %v473_v42  ;;  %v764_v12 = vmul.f32 %v756_v24, %v3295_v20 }
  0xd5   : >> { %567 = vrot.lane.b32.xlu0 %v521_v50, %s2855_s24 }
  0xdc   : >> { %644 = vrot.lane.b32.xlu2 %v610_v53, %s2856_s15  ;;  %569 = vrot.lane.b32.xlu1 %v522_v55, %s2855_s24  ;;  %v3298_v53 = vld [vmem:[%s3152_s26 + $0x2a] sm:$0xf] }
  0xdd   : >> { %640 = vrot.lane.b32.xlu0 %v608_v54, %s2856_s15  ;;  %v3301_v54 = vld [vmem:[%s3152_s26 + $0x22] sm:$0xff]  ;;  %v763_v55 = vmul.f32 %v756_v24, %v3298_v53 }
  0xe4   : >> { %650 = vrot.lane.b32.xlu2 %v613_v56, %s2856_s15  ;;  %642 = vrot.lane.b32.xlu1 %v609_v57, %s2856_s15  ;;  %v762_v56 = vmul.f32 %v756_v24, %v3301_v54 }
  0xe5   : >> { %646 = vrot.lane.b32.xlu0 %v611_v58, %s2856_s15  ;;  %v3312_v58 = vld [vmem:[%s3152_s26 + $0x4a] sm:$0xf] }
  0xec   : >> { %656 = vrot.lane.b32.xlu2 %v616_v59, %s2856_s15  ;;  %648 = vrot.lane.b32.xlu1 %v612_v60, %s2856_s15  ;;  %v3315_v59 = vld [vmem:[%s3152_s26 + $0x42] sm:$0xff]  ;;  %v3318_v60 = vld [vmem:[%s3152_s26 + $0x3a] sm:$0xf] }
  0xed   : >> { %652 = vrot.lane.b32.xlu0 %v614_v61, %s2856_s15  ;;  %v767_v61 = vmul.f32 %v756_v24, %v3312_v58 }
  0xf4   : >> { %662 = vrot.lane.b32.xlu2 %v619_v62, %s2856_s15  ;;  %654 = vrot.lane.b32.xlu1 %v615_v63, %s2856_s15  ;;  %v766_v62 = vmul.f32 %v756_v24, %v3315_v59  ;;  %v765_v63 = vmul.f32 %v756_v24, %v3318_v60 }
  0xf5   : >> { %658 = vrot.lane.b32.xlu0 %v617_v17, %s2856_s15 }
  0xfc   : >> { %668 = vrot.lane.b32.xlu2 %v622_v18, %s2856_s15  ;;  %660 = vrot.lane.b32.xlu1 %v618_v19, %s2856_s15  ;;  %v3329_v18 = vld [vmem:[%s3152_s26 + $0x62] sm:$0xff]  ;;  %v3332_v19 = vld [vmem:[%s3152_s26 + $0x5a] sm:$0xf] }
  0xfd   : >> { %664 = vrot.lane.b32.xlu0 %v620_v23, %s2856_s15  ;;  %4362 = vst [vmem:[#allocation17_spill] sm:$0xff] %v3332_v19  ;;  %v3335_v23 = vld [vmem:[%s3152_s26 + $0x52] sm:$0xff] }
  0xfe   : >> { %4363 = vst [vmem:[#allocation18_spill] sm:$0xff] %v3335_v23 }
 0x104   : >> { %790 = vrot.lane.b32.xlu2 %v758_v26, %s2855_s24  ;;  %666 = vrot.lane.b32.xlu1 %v621_v30, %s2856_s15  ;;  %v770_v26 = vmul.f32 %v756_v24, %v3329_v18  ;;  %v769_v30 = vmul.f32 %v756_v24, %v3332_v19 }
 0x105   : >> { %670 = vrot.lane.b32.xlu0 %v623_v31, %s2856_s15  ;;  %v768_v31 = vmul.f32 %v756_v24, %v3335_v23  ;;  %v478_v23 = vmul.f32 %v3269_v32, %v3191_v35 }
 0x10c   : >> { %796 = vrot.lane.b32.xlu2 %v761_v43, %s2855_s24  ;;  %794 = vrot.lane.b32.xlu1 %v760_v44, %s2855_s24 }
 0x10d   : >> { %792 = vrot.lane.b32.xlu0 %v759_v48, %s2855_s24  ;;  %v3346_v48 = vld [vmem:[%s3152_s26 + $0x7a] sm:$0xf] }
 0x10e   : >> { %v546_v50 = vpop.permute.xlu2 %545  ;;  %4364 = vst [vmem:[#allocation19_spill] sm:$0xff] %v3346_v48 }
 0x10f   : >> { %v3292_v51 = vadd.f32 %v546_v50, %v489_v49  ;;  %v3349_v49 = vld [vmem:[%s3152_s26 + $0x72] sm:$0xff]  ;;  %v3352_v50 = vld [vmem:[%s3152_s26 + $0x6a] sm:$0xf] }
 0x110   : >> { %4365 = vst [vmem:[#allocation20_spill] sm:$0xff] %v3349_v49 }
 0x111   : >> { %4366 = vst [vmem:[#allocation21_spill] sm:$0xff] %v3352_v50 }
 0x114   : >> { %802 = vrot.lane.b32.xlu2 %v764_v12, %s2855_s24  ;;  %800 = vrot.lane.b32.xlu1 %v763_v55, %s2855_s24  ;;  %v773_v12 = vmul.f32 %v756_v24, %v3346_v48  ;;  %v772_v55 = vmul.f32 %v756_v24, %v3349_v49 }
 0x115   : >> { %798 = vrot.lane.b32.xlu0 %v762_v56, %s2855_s24  ;;  %v771_v56 = vmul.f32 %v756_v24, %v3352_v50  ;;  %v475_v24 = vmul.f32 %v3269_v32, %v3176_v29  ;;  %v494_v29 = vadd.f32 %v2793_v7, %v478_v23  ;;  %v484_v23 = vmul.f32 %v3269_v32, %v3221_v47 }
 0x116   : >> { %v3309_v57 = vpop.permute.xlu2 %547  ;;  %v476_v47 = vmul.f32 %v3269_v32, %v3188_v34 }
 0x11c   : >> { %808 = vrot.lane.b32.xlu2 %v767_v61, %s2855_s24  ;;  %806 = vrot.lane.b32.xlu1 %v766_v62, %s2855_s24  ;;  %v472_v61 = vmul.f32 %v3269_v32, %v3173_v28  ;;  %v491_v28 = vadd.f32 %v2805_v10, %v475_v24 }
 0x11d   : >> { %804 = vrot.lane.b32.xlu0 %v765_v63, %s2855_s24 }
 0x11e   : >> { %v3326_v17 = vpop.permute.xlu2 %553 }
 0x124   : >> { %814 = vrot.lane.b32.xlu2 %v770_v26, %s2855_s24  ;;  %812 = vrot.lane.b32.xlu1 %v769_v30, %s2855_s24  ;;  %v488_v30 = vadd.f32 %v2817_v13, %v472_v61 }
 0x125   : >> { %810 = vrot.lane.b32.xlu0 %v768_v31, %s2855_s24  ;;  %v854_v31 = vperm.slane %v3140_v16, 5 }
 0x126   : >> { %v3343_v42 = vpop.permute.xlu2 %559  ;;  %v542_v43 = vpop.permute.xlu1 %541 }
 0x127   : >> { %v540_v44 = vpop.permute.xlu0 %539 }
 0x12c   : >> { %820 = vrot.lane.b32.xlu2 %v773_v12, %s2855_s24  ;;  %818 = vrot.lane.b32.xlu1 %v772_v55, %s2855_s24 }
 0x12d   : >> { %816 = vrot.lane.b32.xlu0 %v771_v56, %s2855_s24 }
 0x12e   : >> { %v3362_v62 = vpop.permute.xlu2 %565  ;;  %v544_v63 = vpop.permute.xlu1 %543 }
 0x12f   : >> { %v550_v26 = vpop.permute.xlu0 %549  ;;  %v589_v48 = vadd.f32 %v544_v63, %v488_v30 }
 0x130   : >> { %v592_v50 = vadd.f32 %v550_v26, %v491_v28  ;;  %v471_v28 = vmul.f32 %v3269_v32, %v3158_v21 }
 0x135   : >> { %856 = vrot.lane.b32.xlu0 %v854_v31, %s2854_s29  ;;  %v481_v31 = vmul.f32 %v3269_v32, %v3206_v41 }
 0x136   : >> { %v645_v12 = vpop.permute.xlu2 %644  ;;  %v552_v55 = vpop.permute.xlu1 %551 }
 0x137   : >> { %v3369_v56 = vadd.f32 %v645_v12, %v589_v48  ;;  %v556_v49 = vpop.permute.xlu0 %555  ;;  %v470_v48 = vmul.f32 %v3269_v32, %v3161_v22  ;;  %v497_v35 = vadd.f32 %v2781_v4, %v481_v31  ;;  %v500_v4 = vadd.f32 %v2769_v1, %v484_v23 }
 0x138   : >> { %v595_v30 = vadd.f32 %v556_v49, %v494_v29 }
 0x13e   : >> { %v651_v13 = vpop.permute.xlu2 %650  ;;  %v558_v61 = vpop.permute.xlu1 %557 }
 0x13f   : >> { %v3374_v19 = vadd.f32 %v651_v13, %v592_v50  ;;  %v562_v63 = vpop.permute.xlu0 %561  ;;  %v486_v50 = vadd.f32 %v2825_v15, %v470_v48  ;;  %v474_v15 = vmul.f32 %v3269_v32, %v3170_v27 }
 0x140   : >> { %v598_v7 = vadd.f32 %v562_v63, %v497_v35 }
 0x141   : >> { %v587_v41 = vadd.f32 %v540_v44, %v486_v50 }
 0x146   : >> { %v657_v12 = vpop.permute.xlu2 %656  ;;  %v564_v10 = vpop.permute.xlu1 %563 }
 0x147   : >> { %v3381_v26 = vadd.f32 %v657_v12, %v595_v30  ;;  %v568_v24 = vpop.permute.xlu0 %567  ;;  %v487_v12 = vadd.f32 %v2821_v14, %v471_v28  ;;  %v490_v14 = vadd.f32 %v2809_v11, %v474_v15 }
 0x148   : >> { %v601_v63 = vadd.f32 %v568_v24, %v500_v4  ;;  %v477_v24 = vmul.f32 %v3269_v32, %v3185_v33 }
 0x149   : >> { %v588_v21 = vadd.f32 %v542_v43, %v487_v12  ;;  %v492_v43 = vadd.f32 %v2801_v9, %v476_v47  ;;  %v591_v34 = vadd.f32 %v3309_v57, %v490_v14 }
 0x14a   : >> { %v493_v15 = vadd.f32 %v2797_v8, %v477_v24 }
 0x14b   : >> { %v593_v23 = vadd.f32 %v552_v55, %v492_v43  ;;  %v480_v55 = vmul.f32 %v3269_v32, %v3200_v39 }
 0x14c   : >> { %v594_v33 = vadd.f32 %v3326_v17, %v493_v15 }
 0x14d   : >> { %v496_v14 = vadd.f32 %v2785_v5, %v480_v55 }
 0x14e   : >> { %v663_v49 = vpop.permute.xlu2 %662  ;;  %v3389_v13 = vpop.permute.xlu1 %569 }
 0x14f   : >> { %v3391_v22 = vadd.f32 %v663_v49, %v598_v7  ;;  %v641_v29 = vpop.permute.xlu0 %640  ;;  %v3404_v7 = vperm.slane %v3140_v16, 3  ;;  %v597_v39 = vadd.f32 %v3343_v42, %v496_v14 }
 0x150   : >> { %v688_v30 = vadd.f32 %v641_v29, %v587_v41  ;;  %v479_v41 = vmul.f32 %v3269_v32, %v3203_v40 }
 0x151   : >> { %v721_v27 = vmul.f32 %v3404_v7, %v3263_v25  ;;  %v724_v9 = vmul.f32 %v3404_v7, %v3275_v36 }
 0x152   : >> { %v495_v57 = vadd.f32 %v2789_v6, %v479_v41  ;;  %v727_v6 = vmul.f32 %v3404_v7, %v3295_v20 }
 0x153   : >> { %v737_v28 = vadd.f32 %v721_v27, %v688_v30  ;;  %v485_v27 = vmul.f32 %v3269_v32, %v3230_v52 }
 0x154   : >> { %v596_v30 = vadd.f32 %v558_v61, %v495_v57  ;;  %v483_v61 = vmul.f32 %v3269_v32, %v3215_v45 }
 0x155   : >> { %v501_v42 = vadd.f32 %v2765_v0, %v485_v27  ;;  %v722_v0 = vmul.f32 %v3404_v7, %v3281_v38 }
 0x156   : >> { %v669_v44 = vpop.permute.xlu2 %668  ;;  %v643_v31 = vpop.permute.xlu1 %642  ;;  %v499_v41 = vadd.f32 %v2773_v2, %v483_v61  ;;  %v733_v2 = vmul.f32 %v3404_v7, %v3329_v18  ;;  %v728_v61 = vmul.f32 %v3404_v7, %v3318_v60 }
 0x157   : >> { %v3399_v48 = vadd.f32 %v669_v44, %v601_v63  ;;  %v3401_v35 = vadd.f32 %v643_v31, %v588_v21  ;;  %v647_v50 = vpop.permute.xlu0 %646  ;;  %v482_v21 = vmul.f32 %v3269_v32, %v3218_v46 }
 0x158   : >> { %v691_v1 = vadd.f32 %v647_v50, %v3292_v51  ;;  %v600_v45 = vadd.f32 %v3362_v62, %v499_v41 }
 0x159   : >> { %v498_v17 = vadd.f32 %v2777_v3, %v482_v21  ;;  %v730_v3 = vmul.f32 %v3404_v7, %v3312_v58  ;;  %v738_v55 = vadd.f32 %v722_v0, %v3401_v35 }
 0x15a   : >> { %v740_v40 = vadd.f32 %v724_v9, %v691_v1  ;;  %v723_v9 = vmul.f32 %v3404_v7, %v3278_v37 }
 0x15b   : >> { %v599_v1 = vadd.f32 %v564_v10, %v498_v17 }
 0x15e   : >> { %v791_v49 = vpop.permute.xlu2 %790  ;;  %v649_v29 = vpop.permute.xlu1 %648 }
 0x15f   : >> { %v3416_v51 = vadd.f32 %v791_v49, %v737_v28  ;;  %v692_v11 = vadd.f32 %v649_v29, %v591_v34  ;;  %v653_v12 = vpop.permute.xlu0 %652  ;;  %v602_v49 = vadd.f32 %v3389_v13, %v501_v42  ;;  %v739_v13 = vadd.f32 %v723_v9, %v3369_v56 }
 0x160   : >> { %v694_v4 = vadd.f32 %v653_v12, %v593_v23 }
 0x162   : >> { %v743_v46 = vadd.f32 %v727_v6, %v694_v4 }
 0x166   : >> { %v797_v63 = vpop.permute.xlu2 %796  ;;  %v655_v47 = vpop.permute.xlu1 %654 }
 0x167   : >> { %v3427_v44 = vadd.f32 %v797_v63, %v740_v40  ;;  %v695_v8 = vadd.f32 %v655_v47, %v594_v33  ;;  %v659_v31 = vpop.permute.xlu0 %658  ;;  %v726_v47 = vmul.f32 %v3404_v7, %v3298_v53 }
 0x168   : >> { %v697_v50 = vadd.f32 %v659_v31, %v596_v30  ;;  %v725_v31 = vmul.f32 %v3404_v7, %v3301_v54 }
 0x169   : >> { %v744_v27 = vadd.f32 %v728_v61, %v695_v8 }
 0x16a   : >> { %v746_v10 = vadd.f32 %v730_v3, %v697_v50  ;;  %v742_v50 = vadd.f32 %v726_v47, %v3374_v19  ;;  %v741_v14 = vadd.f32 %v725_v31, %v692_v11 }
 0x16e   : >> { %v803_v43 = vpop.permute.xlu2 %802  ;;  %v661_v34 = vpop.permute.xlu1 %660 }
 0x16f   : >> { %v3438_v24 = vadd.f32 %v803_v43, %v743_v46  ;;  %v698_v5 = vadd.f32 %v661_v34, %v597_v39  ;;  %v665_v28 = vpop.permute.xlu0 %664  ;;  %v729_v39 = vmul.f32 %v3404_v7, %v3315_v59 }
 0x170   : >> { %v700_v23 = vadd.f32 %v665_v28, %v599_v1  ;;  %v4367_v28 = vld [vmem:[#allocation17_spill] sm:$0xff] }
 0x171   : >> { %v745_v46 = vadd.f32 %v729_v39, %v3381_v26  ;;  %v732_v11 = vmul.f32 %v3404_v7, %v4367_v28 }
 0x172   : >> { %v749_v62 = vadd.f32 %v733_v2, %v700_v23  ;;  %v4368_v23 = vld [vmem:[#allocation18_spill] sm:$0xff] }
 0x173   : >> { %v731_v41 = vmul.f32 %v3404_v7, %v4368_v23  ;;  %v748_v3 = vadd.f32 %v732_v11, %v3391_v22 }
 0x176   : >> { %v809_v52 = vpop.permute.xlu2 %808  ;;  %v667_v32 = vpop.permute.xlu1 %666 }
 0x177   : >> { %v3446_v29 = vadd.f32 %v809_v52, %v746_v10  ;;  %v701_v12 = vadd.f32 %v667_v32, %v600_v45  ;;  %v671_v4 = vpop.permute.xlu0 %670  ;;  %v747_v45 = vadd.f32 %v731_v41, %v698_v5  ;;  %v4369_v52 = vld [vmem:[#allocation21_spill] sm:$0xff] }
 0x178   : >> { %v3448_v15 = vadd.f32 %v671_v4, %v602_v49  ;;  %v734_v8 = vmul.f32 %v3404_v7, %v4369_v52 }
 0x17a   : >> { %v750_v32 = vadd.f32 %v734_v8, %v701_v12  ;;  %v3570_v8 = vld [vmem:[%s3152_s26 + $0x2c] sm:$0xf] }
 0x17e   : >> { %v815_v57 = vpop.permute.xlu2 %814  ;;  %v795_v33 = vpop.permute.xlu1 %794 }
 0x17f   : >> { %v3458_v40 = vadd.f32 %v815_v57, %v749_v62  ;;  %v3460_v30 = vadd.f32 %v795_v33, %v739_v13  ;;  %v793_v21 = vpop.permute.xlu0 %792  ;;  %v4371_v33 = vld [vmem:[#allocation19_spill] sm:$0xff] }
 0x180   : >> { %v3462_v63 = vadd.f32 %v793_v21, %v738_v55 }
 0x186   : >> { %v801_v56 = vpop.permute.xlu1 %800  ;;  %v3521_v21 = vpop.permute.xlu2 %820 }
 0x187   : >> { %v3469_v6 = vadd.f32 %v801_v56, %v742_v50  ;;  %v799_v35 = vpop.permute.xlu0 %798 }
 0x188   : >> { %v842_v17 = vadd.f32 %v799_v35, %v741_v14 }
 0x18e   : >> { %v807_v1 = vpop.permute.xlu1 %806 }
 0x18f   : >> { %v3476_v43 = vadd.f32 %v807_v1, %v745_v46  ;;  %v805_v34 = vpop.permute.xlu0 %804 }
 0x190   : >> { %v845_v19 = vadd.f32 %v805_v34, %v744_v27 }
 0x196   : >> { %v813_v42 = vpop.permute.xlu1 %812 }
 0x197   : >> { %v3483_v10 = vadd.f32 %v813_v42, %v748_v3  ;;  %v811_v49 = vpop.permute.xlu0 %810  ;;  %v3549_v3 = vld [vmem:[%s3152_s26 + $0x14] sm:$0xff]  ;;  %v3552_v42 = vld [vmem:[%s3152_s26 + $0x4] sm:$0xff] }
 0x198   : >> { %v848_v26 = vadd.f32 %v811_v49, %v747_v45 }
 0x19e   : >> { %v3528_v14 = vpop.permute.xlu1 %818 }
 0x19f   : >> { %v817_v4 = vpop.permute.xlu0 %816 }
 0x1a0   : >> { %v851_v2 = vadd.f32 %v817_v4, %v750_v32  ;;  %v3573_v32 = vld [vmem:[%s3152_s26 + $0x1c] sm:$0xf] }
 0x1a7   : >> { %v857_v9 = vpop.permute.xlu0 %856 }
 0x1a8   : >> { %v861_v0 = vmul.f32 %v857_v9, %v3278_v37  ;;  %v860_v62 = vmul.f32 %v857_v9, %v3281_v38  ;;  %v859_v13 = vmul.f32 %v857_v9, %v3263_v25  ;;  %v864_v22 = vmul.f32 %v857_v9, %v3298_v53 }
 0x1a9   : >> { %v863_v5 = vmul.f32 %v857_v9, %v3301_v54  ;;  %v862_v12 = vmul.f32 %v857_v9, %v3275_v36  ;;  %v867_v25 = vmul.f32 %v857_v9, %v3315_v59  ;;  %v866_v37 = vmul.f32 %v857_v9, %v3318_v60  ;;  %v4370_v59 = vld [vmem:[#allocation20_spill] sm:$0xff] }
 0x1aa   : >> { %895 = vrot.lane.b32.xlu0 %v861_v0, %s2856_s15  ;;  %893 = vrot.lane.b32.xlu2 %v860_v62, %s2856_s15  ;;  %v865_v38 = vmul.f32 %v857_v9, %v3295_v20  ;;  %v870_v36 = vmul.f32 %v857_v9, %v4367_v28  ;;  %v869_v53 = vmul.f32 %v857_v9, %v4368_v23  ;;  %v3581_v0 = vld [vmem:[%s3152_s26 + $0x24] sm:$0xff] }
 0x1ab   : >> { %891 = vrot.lane.b32.xlu1 %v859_v13, %s2856_s15  ;;  %v868_v54 = vmul.f32 %v857_v9, %v3312_v58  ;;  %v873_v20 = vmul.f32 %v857_v9, %v4370_v59  ;;  %v872_v60 = vmul.f32 %v857_v9, %v4369_v52  ;;  %v871_v57 = vmul.f32 %v857_v9, %v3329_v18 }
 0x1ac   : >> { %v1004_v58 = vperm.slane %v3140_v16, 7  ;;  %v874_v55 = vmul.f32 %v857_v9, %v4371_v33 }
 0x1b2   : >> { %901 = vrot.lane.b32.xlu0 %v864_v22, %s2856_s15  ;;  %899 = vrot.lane.b32.xlu2 %v863_v5, %s2856_s15  ;;  %v3594_v22 = vld [vmem:[%s3152_s26 + $0x3c] sm:$0xf]  ;;  %v2515_v5 = vld [vmem:[%s3137_s20 + $0x8] ss:$0 sm:$0xff] }
 0x1b3   : >> { %897 = vrot.lane.b32.xlu1 %v862_v12, %s2856_s15 }
 0x1ba   : >> { %907 = vrot.lane.b32.xlu0 %v867_v25, %s2856_s15  ;;  %905 = vrot.lane.b32.xlu2 %v866_v37, %s2856_s15 }
 0x1bb   : >> { %903 = vrot.lane.b32.xlu1 %v865_v38, %s2856_s15  ;;  %v3606_v38 = vld [vmem:[%s3152_s26 + $0x44] sm:$0xff] }
 0x1c2   : >> { %913 = vrot.lane.b32.xlu0 %v870_v36, %s2856_s15  ;;  %911 = vrot.lane.b32.xlu2 %v869_v53, %s2856_s15  ;;  %v3609_v36 = vld [vmem:[%s3152_s26 + $0x4c] sm:$0xf]  ;;  %v3612_v53 = vld [vmem:[%s3152_s26 + $0x54] sm:$0xff] }
 0x1c3   : >> { %909 = vrot.lane.b32.xlu1 %v868_v54, %s2856_s15 }
 0x1ca   : >> { %919 = vrot.lane.b32.xlu0 %v873_v20, %s2856_s15  ;;  %917 = vrot.lane.b32.xlu2 %v872_v60, %s2856_s15  ;;  %v3621_v60 = vld [vmem:[%s3152_s26 + $0x5c] sm:$0xf] }
 0x1cb   : >> { %915 = vrot.lane.b32.xlu1 %v871_v57, %s2856_s15  ;;  %v3624_v57 = vld [vmem:[%s3152_s26 + $0x64] sm:$0xff] }
 0x1d2   : >> { %1006 = vrot.lane.b32.xlu2 %v1004_v58, %s2853_s13  ;;  %v3627_v58 = vld [vmem:[%s3152_s26 + $0x6c] sm:$0xf] }
 0x1d3   : >> { %921 = vrot.lane.b32.xlu1 %v874_v55, %s2856_s15 }
 0x204   : >> { %v894_v47 = vpop.permute.xlu2 %893 }
 0x205   : >> { %v3524_v31 = vadd.f32 %v894_v47, %v3462_v63 }
 0x20c   : >> { %v900_v18 = vpop.permute.xlu2 %899 }
 0x20d   : >> { %v3526_v50 = vadd.f32 %v900_v18, %v842_v17 }
 0x214   : >> { %v906_v56 = vpop.permute.xlu2 %905 }
 0x215   : >> { %v3530_v35 = vadd.f32 %v906_v56, %v845_v19  ;;  %v3636_v56 = vld [vmem:[%s3152_s26 + $0x74] sm:$0xff] }
 0x21c   : >> { %v896_v39 = vpop.permute.xlu0 %895  ;;  %v912_v61 = vpop.permute.xlu2 %911 }
 0x21d   : >> { %v3533_v46 = vadd.f32 %v896_v39, %v3460_v30  ;;  %v3535_v1 = vadd.f32 %v912_v61, %v848_v26  ;;  %v892_v63 = vpop.permute.xlu1 %891  ;;  %v3639_v39 = vld [vmem:[%s3152_s26 + $0x7c] sm:$0xf] }
 0x21e   : >> { %v3538_v27 = vadd.f32 %v892_v63, %v3416_v51  ;;  %v3555_v51 = vld [vmem:[%s3152_s26 + $0xc] sm:$0xf] }
 0x224   : >> { %v902_v17 = vpop.permute.xlu0 %901  ;;  %v918_v34 = vpop.permute.xlu2 %917 }
 0x225   : >> { %v3541_v28 = vadd.f32 %v902_v17, %v3469_v6  ;;  %v3543_v19 = vadd.f32 %v918_v34, %v851_v2  ;;  %v898_v11 = vpop.permute.xlu1 %897  ;;  %v3646_v17 = vperm.slane %v3140_v16, 6 }
 0x226   : >> { %v3546_v23 = vadd.f32 %v898_v11, %v3427_v44 }
 0x227   : >> { %v974_v34 = vmul.f32 %v3646_v17, %v3549_v3 }
 0x229   : >> { %v990_v11 = vadd.f32 %v974_v34, %v3533_v46  ;;  %v973_v46 = vmul.f32 %v3646_v17, %v3555_v51 }
 0x22c   : >> { %v908_v30 = vpop.permute.xlu0 %907  ;;  %v1007_v41 = vpop.permute.xlu2 %1006 }
 0x22d   : >> { %v3558_v45 = vadd.f32 %v908_v30, %v3476_v43  ;;  %v904_v6 = vpop.permute.xlu1 %903  ;;  %v1011_v49 = vmul.f32 %v1007_v41, %v3549_v3  ;;  %v1009_v44 = vmul.f32 %v1007_v41, %v3552_v42  ;;  %v1010_v26 = vmul.f32 %v1007_v41, %v3555_v51 }
 0x22e   : >> { %v3564_v52 = vadd.f32 %v904_v6, %v3438_v24  ;;  %v1014_v24 = vmul.f32 %v1007_v41, %v3570_v8  ;;  %v1012_v9 = vmul.f32 %v1007_v41, %v3573_v32  ;;  %v1013_v13 = vmul.f32 %v1007_v41, %v3581_v0 }
 0x22f   : >> { %1045 = vrot.lane.b32.xlu2 %v1011_v49, %s2855_s24  ;;  %1041 = vrot.lane.b32.xlu0 %v1009_v44, %s2855_s24  ;;  %v1019_v54 = vmul.f32 %v1007_v41, %v3612_v53  ;;  %v1017_v20 = vmul.f32 %v1007_v41, %v3606_v38  ;;  %v1022_v55 = vmul.f32 %v1007_v41, %v3627_v58 }
 0x230   : >> { %1043 = vrot.lane.b32.xlu1 %v1010_v26, %s2855_s24  ;;  %v1020_v47 = vmul.f32 %v1007_v41, %v3621_v60  ;;  %v1021_v18 = vmul.f32 %v1007_v41, %v3624_v57  ;;  %v1023_v61 = vmul.f32 %v1007_v41, %v3636_v56  ;;  %v1024_v63 = vmul.f32 %v1007_v41, %v3639_v39 }
 0x231   : >> { %v977_v49 = vmul.f32 %v3646_v17, %v3570_v8 }
 0x234   : >> { %v914_v43 = vpop.permute.xlu0 %913 }
 0x235   : >> { %v3576_v4 = vadd.f32 %v914_v43, %v3483_v10  ;;  %v910_v2 = vpop.permute.xlu1 %909  ;;  %v3591_v10 = vld [vmem:[%s3152_s26 + $0x34] sm:$0xff] }
 0x236   : >> { %v3584_v62 = vadd.f32 %v910_v2, %v3446_v29  ;;  %v1016_v29 = vmul.f32 %v1007_v41, %v3594_v22  ;;  %v1015_v25 = vmul.f32 %v1007_v41, %v3591_v10  ;;  %v972_v2 = vmul.f32 %v3646_v17, %v3552_v42 }
 0x237   : >> { %1051 = vrot.lane.b32.xlu2 %v1014_v24, %s2855_s24  ;;  %1047 = vrot.lane.b32.xlu0 %v1012_v9, %s2855_s24 }
 0x238   : >> { %1049 = vrot.lane.b32.xlu1 %v1013_v13, %s2855_s24  ;;  %v988_v24 = vadd.f32 %v972_v2, %v3538_v27  ;;  %v989_v13 = vadd.f32 %v973_v46, %v3524_v31 }
 0x23c   : >> { %v3658_v43 = vpop.permute.xlu0 %919 }
 0x23d   : >> { %v916_v12 = vpop.permute.xlu1 %915 }
 0x23e   : >> { %v3600_v37 = vadd.f32 %v916_v12, %v3458_v40  ;;  %v1018_v40 = vmul.f32 %v1007_v41, %v3609_v36  ;;  %v993_v41 = vadd.f32 %v977_v49, %v3541_v28 }
 0x23f   : >> { %1055 = vrot.lane.b32.xlu2 %v1016_v29, %s2855_s24  ;;  %1053 = vrot.lane.b32.xlu0 %v1015_v25, %s2855_s24  ;;  %v975_v29 = vmul.f32 %v3646_v17, %v3573_v32  ;;  %v976_v25 = vmul.f32 %v3646_v17, %v3581_v0 }
 0x240   : >> { %1107 = vrot.lane.b32.xlu1 %v2515_v5, %s2854_s29  ;;  %s4069_s29 = smov (%p3788_p3), 0  }
 0x245   : >> { %v3660_v16 = vpop.permute.xlu1 %921 }
 0x247   : >> { %1061 = vrot.lane.b32.xlu2 %v1019_v54, %s2855_s24  ;;  %1057 = vrot.lane.b32.xlu0 %v1017_v20, %s2855_s24  ;;  %v991_v54 = vadd.f32 %v975_v29, %v3546_v23 }
 0x248   : >> { %1059 = vrot.lane.b32.xlu1 %v1018_v40, %s2855_s24  ;;  %v992_v40 = vadd.f32 %v976_v25, %v3526_v50 }
 0x24f   : >> { %1067 = vrot.lane.b32.xlu2 %v1022_v55, %s2855_s24  ;;  %1063 = vrot.lane.b32.xlu0 %v1020_v47, %s2855_s24 }
 0x250   : >> { %1065 = vrot.lane.b32.xlu1 %v1021_v18, %s2855_s24 }
 0x257   : >> { %1069 = vrot.lane.b32.xlu0 %v1023_v61, %s2855_s24 }
 0x258   : >> { %1071 = vrot.lane.b32.xlu1 %v1024_v63, %s2855_s24 }
 0x289   : >> { %v1046_v30 = vpop.permute.xlu2 %1045 }
 0x28a   : >> { %v3651_v6 = vadd.f32 %v1046_v30, %v990_v11 }
 0x291   : >> { %v1052_v44 = vpop.permute.xlu2 %1051 }
 0x292   : >> { %v3656_v26 = vadd.f32 %v1052_v44, %v993_v41 }
 0x299   : >> { %v1056_v44 = vpop.permute.xlu2 %1055 }
 0x2a1   : >> { %v1042_v9 = vpop.permute.xlu0 %1041  ;;  %v1062_v2 = vpop.permute.xlu2 %1061 }
 0x2a2   : >> { %v1089_v5 = vadd.f32 %v1042_v9, %v988_v24  ;;  %v1044_v28 = vpop.permute.xlu1 %1043 }
 0x2a3   : >> { %v3668_v12 = vadd.f32 %v1044_v28, %v989_v13 }
 0x2a9   : >> { %v1048_v20 = vpop.permute.xlu0 %1047  ;;  %v3710_v24 = vpop.permute.xlu2 %1067 }
 0x2aa   : >> { %v1092_v55 = vadd.f32 %v1048_v20, %v991_v54  ;;  %v1050_v27 = vpop.permute.xlu1 %1049 }
 0x2ab   : >> { %v3676_v47 = vadd.f32 %v1050_v27, %v992_v40  ;;  %v978_v40 = vmul.f32 %v3646_v17, %v3591_v10 }
 0x2b1   : >> { %v1054_v46 = vpop.permute.xlu0 %1053 }
 0x2b2   : >> { %v1108_v31 = vpop.permute.xlu1 %1107 }
 0x2b3   : >> { %v1112_v18 = vmul.f32 %v1108_v31, %v3549_v3  ;;  %v1111_v61 = vmul.f32 %v1108_v31, %v3555_v51  ;;  %v1110_v63 = vmul.f32 %v1108_v31, %v3552_v42  ;;  %v1115_v23 = vmul.f32 %v1108_v31, %v3570_v8 }
 0x2b4   : >> { %v1114_v50 = vmul.f32 %v1108_v31, %v3581_v0  ;;  %v1113_v34 = vmul.f32 %v1108_v31, %v3573_v32  ;;  %v1118_v3 = vmul.f32 %v1108_v31, %v3606_v38  ;;  %v1117_v42 = vmul.f32 %v1108_v31, %v3594_v22 }
 0x2b5   : >> { %1146 = vrot.lane.b32.xlu1 %v1112_v18, %s2856_s15  ;;  %1144 = vrot.lane.b32.xlu0 %v1111_v61, %s2856_s15  ;;  %v1116_v51 = vmul.f32 %v1108_v31, %v3591_v10  ;;  %v1121_v8 = vmul.f32 %v1108_v31, %v3621_v60  ;;  %v1120_v32 = vmul.f32 %v1108_v31, %v3612_v53 }
 0x2b6   : >> { %1142 = vrot.lane.b32.xlu2 %v1110_v63, %s2856_s15  ;;  %v1119_v0 = vmul.f32 %v1108_v31, %v3609_v36  ;;  %v1124_v11 = vmul.f32 %v1108_v31, %v3636_v56  ;;  %v1123_v30 = vmul.f32 %v1108_v31, %v3627_v58  ;;  %v1122_v49 = vmul.f32 %v1108_v31, %v3624_v57 }
 0x2b7   : >> { %v1125_v41 = vmul.f32 %v1108_v31, %v3639_v39  ;;  %v994_v31 = vadd.f32 %v978_v40, %v3564_v52 }
 0x2b9   : >> { %v1058_v9 = vpop.permute.xlu0 %1057  ;;  %v1095_v18 = vadd.f32 %v1054_v46, %v994_v31  ;;  %v979_v46 = vmul.f32 %v3646_v17, %v3594_v22 }
 0x2ba   : >> { %v1060_v13 = vpop.permute.xlu1 %1059 }
 0x2bd   : >> { %1152 = vrot.lane.b32.xlu1 %v1115_v23, %s2856_s15  ;;  %1150 = vrot.lane.b32.xlu0 %v1114_v50, %s2856_s15  ;;  %v981_v50 = vmul.f32 %v3646_v17, %v3609_v36  ;;  %v984_v36 = vmul.f32 %v3646_v17, %v3624_v57 }
 0x2be   : >> { %1148 = vrot.lane.b32.xlu2 %v1113_v34, %s2856_s15 }
 0x2c1   : >> { %v1064_v25 = vpop.permute.xlu0 %1063 }
 0x2c2   : >> { %v1066_v54 = vpop.permute.xlu1 %1065 }
 0x2c5   : >> { %1158 = vrot.lane.b32.xlu1 %v1118_v3, %s2856_s15  ;;  %1156 = vrot.lane.b32.xlu0 %v1117_v42, %s2856_s15 }
 0x2c6   : >> { %1154 = vrot.lane.b32.xlu2 %v1116_v51, %s2856_s15 }
 0x2c9   : >> { %v1070_v61 = vpop.permute.xlu0 %1069 }
 0x2ca   : >> { %v1072_v63 = vpop.permute.xlu1 %1071 }
 0x2cd   : >> { %1164 = vrot.lane.b32.xlu1 %v1121_v8, %s2856_s15  ;;  %1162 = vrot.lane.b32.xlu0 %v1120_v32, %s2856_s15  ;;  %v736_v32 = vmul.f32 %v3404_v7, %v4371_v33  ;;  %v980_v33 = vmul.f32 %v3646_v17, %v3606_v38 }
 0x2ce   : >> { %1160 = vrot.lane.b32.xlu2 %v1119_v0, %s2856_s15  ;;  %v1000_v0 = vadd.f32 %v984_v36, %v3600_v37 }
 0x2cf   : >> { %v996_v22 = vadd.f32 %v980_v33, %v3558_v45 }
 0x2d1   : >> { %v1097_v40 = vadd.f32 %v1058_v9, %v996_v22 }
 0x2d5   : >> { %1170 = vrot.lane.b32.xlu1 %v1124_v11, %s2856_s15  ;;  %1168 = vrot.lane.b32.xlu0 %v1123_v30, %s2856_s15 }
 0x2d6   : >> { %1166 = vrot.lane.b32.xlu2 %v1122_v49, %s2856_s15 }
 0x2de   : >> { %1172 = vrot.lane.b32.xlu2 %v1125_v41, %s2856_s15 }
 0x310   : >> { %v1143_v28 = vpop.permute.xlu2 %1142 }
 0x311   : >> { %v3712_v29 = vadd.f32 %v1143_v28, %v1089_v5   ;;  %v997_v5 = vadd.f32 %v981_v50, %v3584_v62  ;;  %v752_v62 = vadd.f32 %v736_v32, %v3448_v15 }
 0x313   : >> { %v1098_v3 = vadd.f32 %v1060_v13, %v997_v5  ;;  %v853_v11 = vadd.f32 %v3521_v21, %v752_v62  ;;  %v987_v21 = vmul.f32 %v3646_v17, %v3639_v39  ;;  %v983_v39 = vmul.f32 %v3646_v17, %v3621_v60  ;;  %v1371_v62 = vld [vmem:[%s4317_s4 + $0x10] sm:$0xff] (%p3788_p3) }
 0x314   : >> { %v985_v60 = vmul.f32 %v3646_v17, %v3627_v58 }
 0x315   : >> { %v954_v15 = vadd.f32 %v3660_v16, %v853_v11  ;;  %v982_v16 = vmul.f32 %v3646_v17, %v3612_v53 }
 0x318   : >> { %v1149_v20 = vpop.permute.xlu2 %1148 }
 0x319   : >> { %v3716_v27 = vadd.f32 %v1149_v20, %v1092_v55  }
 0x320   : >> { %v1155_v23 = vpop.permute.xlu2 %1154 }
 0x321   : >> { %v3721_v34 = vadd.f32 %v1155_v23, %v1095_v18  }
 0x327   : >> { %v1145_v42 = vpop.permute.xlu0 %1144  ;;  %v1147_v51 = vpop.permute.xlu1 %1146 }
 0x328   : >> { %v3725_v10 = vadd.f32 %v1145_v42, %v3668_v12   ;;  %v1161_v8 = vpop.permute.xlu2 %1160  ;;  %v3728_v13 = vadd.f32 %v1147_v51, %v3651_v6   ;;  %v1101_v12 = vadd.f32 %v1066_v54, %v1000_v0  ;;  %v1003_v54 = vadd.f32 %v987_v21, %v954_v15  ;;  %v3901_v21 = vld [vmem:[%s4318_s5 + $0x8] sm:$0xf] (%p3788_p3) }
 0x329   : >> { %v3734_v6 = vadd.f32 %v1161_v8, %v1098_v3   ;;  %v4400_v15 = vmov %v3712_v29 }
 0x32a   : >> { %v4372_v55 = vmov %v3725_v10  ;;  %v4373_v52 = vmov %v3728_v13  ;;  %v1104_v31 = vadd.f32 %v1072_v63, %v1003_v54  ;;  %v999_v63 = vadd.f32 %v983_v39, %v3576_v4 }
 0x32b   : >> { %v4374_v30 = vmov %v3734_v6  ;;  %v995_v6 = vadd.f32 %v979_v46, %v3530_v35 }
 0x32c   : >> { %v1100_v53 = vadd.f32 %v1064_v25, %v999_v63 }
 0x32d   : >> { %v1096_v38 = vadd.f32 %v1056_v44, %v995_v6  ;;  %v4391_v6 = vmov %v4374_v30 }
 0x32f   : >> { %v1151_v49 = vpop.permute.xlu0 %1150  ;;  %v1153_v41 = vpop.permute.xlu1 %1152 }
 0x330   : >> { %v3744_v13 = vadd.f32 %v1151_v49, %v3676_v47   ;;  %v1167_v28 = vpop.permute.xlu2 %1166  ;;  %v3747_v10 = vadd.f32 %v1153_v41, %v3656_v26   ;;  %v735_v47 = vmul.f32 %v3404_v7, %v4370_v59  ;;  %v998_v59 = vadd.f32 %v982_v16, %v3535_v1  ;;  %v1370_v41 = vld [vmem:[%s4317_s4 + $0x8] sm:$0xff] (%p3788_p3) }
 0x331   : >> { %v3752_v3 = vadd.f32 %v1167_v28, %v1101_v12   ;;  %v1001_v1 = vadd.f32 %v985_v60, %v3543_v19  ;;  %v4397_v12 = vmov %v3716_v27  ;;  %v1374_v19 = vld [vmem:[%s4317_s4 + $0x28] sm:$0xff] (%p3788_p3) }
 0x332   : >> { %v4375_v57 = vmov %v3744_v13  ;;  %v4376_v20 = vmov %v3747_v10  ;;  %v751_v9 = vadd.f32 %v735_v47, %v3399_v48  ;;  %v1099_v5 = vadd.f32 %v1062_v2, %v998_v59  ;;  %1453 = vmatpush.msra.mxu0 (%p3788_p3), %v1374_v19  ;;  %2208 = vmatpush.msra.mxu3 (%p3788_p3), %v1374_v19 }
 0x333   : >> { %v4377_v37 = vmov %v3752_v3  ;;  %v4396_v11 = vmov %v4375_v57  ;;  %v4398_v13 = vmov %v4373_v52  ;;  %2206 = vmatpush.msra.mxu1 (%p3788_p3), %v1374_v19  ;;  %2207 = vmatpush.msra.mxu2 (%p3788_p3), %v1374_v19 }
 0x334   : >> { %v852_v50 = vadd.f32 %v3528_v14, %v751_v9  ;;  %v1102_v14 = vadd.f32 %v3710_v24, %v1001_v1  ;;  %v4394_v9 = vmov %v3721_v34  ;;  %v3864_v24 = vld [vmem:[%s4316_s3] ss:$0 sm:$0xff] (%p3788_p3) }
 0x336   : >> { %v953_v51 = vadd.f32 %v3658_v43, %v852_v50  ;;  %v3857_v43 = vld [vmem:[%s4315_s2] ss:$0 sm:$0xff] (%p3788_p3) }
 0x337   : >> { %v1157_v26 = vpop.permute.xlu0 %1156  ;;  %v1159_v18 = vpop.permute.xlu1 %1158  ;;  %v1211_v11 = vmul.f32 (%p3788_p3), %v3857_v43, %v4372_v55  ;;  %v1212_v12 = vmul.f32 (%p3788_p3), %v3857_v43, %v4373_v52  ;;  %v1213_v49 = vmul.f32 (%p3788_p3), %v3857_v43, %v3716_v27  ;;  %v1369_v27 = vld [vmem:[%s4317_s4] sm:$0xff] (%p3788_p3)  ;;  %v1215_v15 = vmul.f32 (%p3788_p3), %v3857_v43, %v4376_v20 }
 0x338   : >> { %v3762_v8 = vadd.f32 %v1157_v26, %v1096_v38   ;;  %v1173_v35 = vpop.permute.xlu2 %1172  ;;  %v3764_v7 = vadd.f32 %v1159_v18, %v1097_v40   ;;  %v1216_v6 = vmul.f32 (%p3788_p3), %v3857_v43, %v3721_v34 }
 0x339   : >> { %v3766_v0 = vadd.f32 %v1173_v35, %v1104_v31   ;;  %v1232_v33 = vadd.f32 (%p3788_p3), %v3864_v24, %v1212_v12  ;;  %v1233_v22 = vadd.f32 (%p3788_p3), %v3864_v24, %v1213_v49  ;;  %v1235_v39 = vadd.f32 (%p3788_p3), %v3864_v24, %v1215_v15 }
 0x33a   : >> { %v4378_v23 = vmov %v3762_v8  ;;  %v4379_v45 = vmov %v3764_v7  ;;  %v986_v7 = vmul.f32 %v3646_v17, %v3636_v56  ;;  %v1373_v56 = vld [vmem:[%s4317_s4 + $0x20] sm:$0xff] (%p3788_p3)  ;;  %v1372_v17 = vld [vmem:[%s4317_s4 + $0x18] sm:$0xff] (%p3788_p3) }
 0x33b   : >> { %v4380_v44 = vmov %v3766_v0  ;;  %1454 = vmatpush.msra.mxu0 (%p3788_p3), %v1373_v56  ;;  %2211 = vmatpush.msra.mxu3 (%p3788_p3), %v1373_v56  ;;  %v1248_v28 = vmax.f32 (%p3788_p3), %v1232_v33, 0.0  ;;  %v1249_v50 = vmax.f32 (%p3788_p3), %v1233_v22, 0.0  ;;  %v1222_v22 = vmul.f32 (%p3788_p3), %v3857_v43, %v4377_v37 }
 0x33c   : >> { %v1002_v10 = vadd.f32 %v986_v7, %v953_v51  ;;  %v4385_v0 = vmov %v4380_v44  ;;  %v4392_v7 = vmov %v4379_v45  ;;  %2209 = vmatpush.msra.mxu1 (%p3788_p3), %v1373_v56  ;;  %2210 = vmatpush.msra.mxu2 (%p3788_p3), %v1373_v56  ;;  %v1251_v51 = vmax.f32 (%p3788_p3), %v1235_v39, 0.0 }
 0x33d   : > { %v1210_v0 = vmul.f32 (%p3788_p3), %v3857_v43, %v3712_v29  ;;  %1455 = vmatpush.msra.mxu0 (%p3788_p3), %v1372_v17  ;;  %2214 = vmatpush.msra.mxu3 (%p3788_p3), %v1372_v17  ;;  %v1231_v29 = vadd.f32 (%p3788_p3), %v3864_v24, %v1211_v11  ;;  %v1264_v40 = vmin.f32 (%p3788_p3), %v1248_v28, 6.0 }
 0x33e   : >> { %v1103_v2 = vadd.f32 %v1070_v61, %v1002_v10  ;;  %v4395_v10 = vmov %v4376_v20  ;;  %2212 = vmatpush.msra.mxu1 (%p3788_p3), %v1372_v17  ;;  %2213 = vmatpush.msra.mxu2 (%p3788_p3), %v1372_v17  ;;  %v1218_v20 = vmul.f32 (%p3788_p3), %v3857_v43, %v4379_v45  ;;  %v1236_v45 = vadd.f32 (%p3788_p3), %v3864_v24, %v1216_v6 }
 0x33f   : >> { %v1163_v3 = vpop.permute.xlu0 %1162  ;;  %v1165_v42 = vpop.permute.xlu1 %1164  ;;  %v1230_v46 = vadd.f32 (%p3788_p3), %v3864_v24, %v1210_v0  ;;  %1456 = vmatpush.msra.mxu0 (%p3788_p3), %v1371_v62  ;;  %2217 = vmatpush.msra.mxu3 (%p3788_p3), %v1371_v62  ;;  %v1247_v13 = vmax.f32 (%p3788_p3), %v1231_v29, 0.0  ;;  %v1267_v56 = vmin.f32 (%p3788_p3), %v1251_v51, 6.0 }
 0x340   : >> { %v3777_v5 = vadd.f32 %v1163_v3, %v1099_v5   ;;  %v3779_v4 = vadd.f32 %v1165_v42, %v1100_v53   ;;  %v4388_v3 = vmov %v4377_v37  ;;  %2215 = vmatpush.msra.mxu1 (%p3788_p3), %v1371_v62  ;;  %2216 = vmatpush.msra.mxu2 (%p3788_p3), %v1371_v62  ;;  %v1238_v9 = vadd.f32 (%p3788_p3), %v3864_v24, %v1218_v20 }
 0x341   : > { %v1246_v52 = vmax.f32 (%p3788_p3), %v1230_v46, 0.0  ;;  %1457 = vmatpush.msra.mxu0 (%p3788_p3), %v1370_v41  ;;  %2220 = vmatpush.msra.mxu3 (%p3788_p3), %v1370_v41  ;;  %v1263_v38 = vmin.f32 (%p3788_p3), %v1247_v13, 6.0  ;;  %v1219_v3 = vmul.f32 (%p3788_p3), %v3857_v43, %v4374_v30  ;;  %v1225_v30 = vmul.f32 (%p3788_p3), %v3857_v43, %v4380_v44 }
 0x342   : >> { %v4381_v48 = vmov %v3777_v5  ;;  %v4382_v32 = vmov %v3779_v4  ;;  %2218 = vmatpush.msra.mxu1 (%p3788_p3), %v1370_v41  ;;  %2219 = vmatpush.msra.mxu2 (%p3788_p3), %v1370_v41  ;;  %v1254_v10 = vmax.f32 (%p3788_p3), %v1238_v9, 0.0  ;;  %v1285_v29 = vmul.f32 (%p3788_p3), %v3901_v21, %v1267_v56 }
 0x343   : >> { %v4389_v4 = vmov %v4382_v32  ;;  %v4390_v5 = vmov %v4381_v48  ;;  %v1262_v54 = vmin.f32 (%p3788_p3), %v1246_v52, 6.0  ;;  %1458 = vmatpush.msra.mxu0 (%p3788_p3), %v1369_v27  ;;  %2223 = vmatpush.msra.mxu3 (%p3788_p3), %v1369_v27  ;;  %v1281_v26 = vmul.f32 (%p3788_p3), %v3901_v21, %v1263_v38 }
 0x344   : > { %v3859_v4 = vstv (%p3788_p3), %s2167_s30  ;;  %v1220_v35 = vmul.f32 (%p3788_p3), %v3857_v43, %v4381_v48  ;;  %2221 = vmatpush.msra.mxu1 (%p3788_p3), %v1369_v27  ;;  %2222 = vmatpush.msra.mxu2 (%p3788_p3), %v1369_v27  ;;  %v1221_v42 = vmul.f32 (%p3788_p3), %v3857_v43, %v4382_v32  ;;  %v1239_v32 = vadd.f32 (%p3788_p3), %v3864_v24, %v1219_v3 }
 0x345   : > { %v1298_v61 = vadd.s32 (%p3788_p3), 1, %v3859_v4  ;;  %vm1305_vm0 = vcmp.ge.s32.totalorder (%p3788_p3), %v3859_v4, 0  ;;  %vm1313_vm1 = vcmp.lt.s32.totalorder (%p3788_p3), %v3859_v4, 8  ;;  %v1270_v62 = vmin.f32 (%p3788_p3), %v1254_v10, 6.0 }
 0x346   : > { %vm3913_vm4 = vmand (%p3788_p3), %vm1305_vm0, %vm1313_vm1  ;;  %v1240_v48 = vadd.f32 (%p3788_p3), %v3864_v24, %v1220_v35  ;;  %v1241_v19 = vadd.f32 (%p3788_p3), %v3864_v24, %v1221_v42  ;;  %v1301_v12 = vadd.s32 (%p3788_p3), 4, %v3859_v4  ;;  %v3957_v49 = vadd.f32 (%p3788_p3), %v3864_v24, %v1225_v30 }
 0x347   : >> { %v1169_v25 = vpop.permute.xlu0 %1168  ;;  %v1171_v8 = vpop.permute.xlu1 %1170  ;;  %427 = sbr.rel (!%p3788_p3) target bundleno = 58 (0x3a), region = 140  ;;  %vm1306_vm2 = vcmp.ge.s32.totalorder (%p3788_p3), %v1298_v61, 0  ;;  %vm1314_vm3 = vcmp.lt.s32.totalorder (%p3788_p3), %v1298_v61, 8  ;;  %v1330_v63 = vsel (%p3788_p3), %vm3913_vm4, %v1281_v26, 0.0  ;;  %v1255_v41 = vmax.f32 (%p3788_p3), %v1239_v32, 0.0 }
 0x348   : >> { %v3783_v58 = vadd.f32 %v1169_v25, %v1102_v14   ;;  %v3785_v1 = vadd.f32 %v1171_v8, %v1103_v2   ;;  %v4393_v8 = vmov %v4378_v23  ;;  %v4399_v14 = vmov %v4372_v55  ;;  %vm3922_vm5 = vmand (%p3788_p3), %vm1306_vm2, %vm1314_vm3  ;;  %1379 = vst [vmem:[#allocation1 + $0x10] ss:$2 sm:$0xff] (%p3788_p3), %v1330_v63 }
 0x349   : > { %v1214_v55 = vmul.f32 (%p3788_p3), %v3857_v43, %v4375_v57  ;;  %v3896_v57 = vld [vmem:[%s4318_s5] sm:$0xff] (%p3788_p3)  ;;  %v1265_v14 = vmin.f32 (%p3788_p3), %v1249_v50, 6.0  ;;  %v1299_v25 = vadd.s32 (%p3788_p3), 2, %v3859_v4  ;;  %v1300_v8 = vadd.s32 (%p3788_p3), 3, %v3859_v4 }
 0x34a   : >> { %v4383_v36 = vmov %v3785_v1  ;;  %v4387_v2 = vmov %v3783_v58  ;;  %v1280_v34 = vmul.f32 (%p3788_p3), %v3896_v57, %v1262_v54  ;;  %v1282_v18 = vmul.f32 (%p3788_p3), %v3896_v57, %v1264_v40 }
 0x34b   : >> { %v4386_v1 = vmov %v4383_v36  ;;  %v1234_v47 = vadd.f32 (%p3788_p3), %v3864_v24, %v1214_v55  ;;  %v1224_v7 = vmul.f32 (%p3788_p3), %v3857_v43, %v4383_v36  ;;  %v1256_v17 = vmax.f32 (%p3788_p3), %v1240_v48, 0.0 }
 0x34c   : > { %v1329_v59 = vsel %vm3913_vm4, %v1280_v34, 0.0  ;;  %v1331_v60 = vsel %vm3922_vm5, %v1282_v18, 0.0  ;;  %v1252_v1 = vmax.f32 %v1236_v45, 0.0  ;;  %v1283_v0 = vmul.f32 %v3901_v21, %v1265_v14 }
 0x34d   : > { %v1250_v5 = vmax.f32 %v1234_v47, 0.0  ;;  %v1361_v53 = vrot.slane %v1329_v59, 4  ;;  %1375 = vst [vmem:[#allocation1] ss:$2 sm:$0xff] %v1329_v59  ;;  %v3951_v36 = vadd.f32 %v3864_v24, %v1224_v7  ;;  %vm1307_vm7 = vcmp.ge.s32.totalorder %v1299_v25, 0 }
 0x34e   : > { %1381 = vst [vmem:[#allocation1 + $0x11] ss:$2 sm:$0xff] %v1331_v60  ;;  %v1268_v61 = vmin.f32 %v1252_v1, 6.0  ;;  %vm1308_vm8 = vcmp.ge.s32.totalorder %v1300_v8, 0  ;;  %vm1315_vm9 = vcmp.lt.s32.totalorder %v1299_v25, 8  ;;  %vm1316_vm10 = vcmp.lt.s32.totalorder %v1300_v8, 8 }
 0x34f   : > { %1377 = vst [vmem:[#allocation1 + $0x1] ss:$2 sm:$0xff] %v1361_v53  ;;  %v1266_v2 = vmin.f32 %v1250_v5, 6.0  ;;  %v1257_v46 = vmax.f32 %v1241_v19, 0.0  ;;  %vm3960_vm11 = vmand %vm1307_vm7, %vm1315_vm9  ;;  %v1272_v55 = vmin.f32 %v1256_v17, 6.0  ;;  %v1302_v52 = vadd.s32 5, %v3859_v4 }
 0x350   : > { %v1286_v27 = vmul.f32 %v3896_v57, %v1268_v61  ;;  %v1217_v13 = vmul.f32 %v3857_v43, %v4378_v23  ;;  %v1288_v28 = vmul.f32 %v3896_v57, %v1270_v62  ;;  %vm3971_vm12 = vmand %vm1308_vm8, %vm1316_vm10  ;;  %v1332_v6 = vsel %vm3922_vm5, %v1283_v0, 0.0 }
 0x351   : > { %v1284_v11 = vmul.f32 %v3896_v57, %v1266_v2  ;;  %vm1309_vm13 = vcmp.ge.s32.totalorder %v1301_v12, 0  ;;  %vm1317_vm14 = vcmp.lt.s32.totalorder %v1301_v12, 8  ;;  %v1362_v54 = vrot.slane %v1331_v60, 4  ;;  %1385 = vst [vmem:[#allocation1 + $0x21] ss:$2 sm:$0xff] %v1332_v6 }
 0x352   : > { %v1260_v38 = vmax.f32 %v3951_v36, 0.0  ;;  %v1271_v40 = vmin.f32 %v1255_v41, 6.0  ;;  %v1334_v47 = vsel %vm3960_vm11, %v1285_v29, 0.0  ;;  %v1223_v31 = vmul.f32 %v3857_v43, %v3783_v58  ;;  %vm3992_vm1 = vmand %vm1309_vm13, %vm1317_vm14 }
 0x353   : > { %v1333_v20 = vsel %vm3960_vm11, %v1284_v11, 0.0  ;;  %vm1310_vm15 = vcmp.ge.s32.totalorder %v1302_v52, 0  ;;  %vm1318_vm0 = vcmp.lt.s32.totalorder %v1302_v52, 8  ;;  %v1335_v37 = vsel %vm3971_vm12, %v1286_v27, 0.0  ;;  %1383 = vst [vmem:[#allocation1 + $0x20] ss:$2 sm:$0xff] %v1362_v54 }
 0x354   : > { %v1363_v23 = vrot.slane %v1333_v20, 4  ;;  %1387 = vst [vmem:[#allocation1 + $0x30] ss:$2 sm:$0xff] %v1333_v20  ;;  %v1237_v34 = vadd.f32 %v3864_v24, %v1217_v13  ;;  %v1273_v18 = vmin.f32 %v1257_v46, 6.0  ;;  %v1290_v16 = vmul.f32 %v3896_v57, %v1272_v55  ;;  %vm4004_vm2 = vmand %vm1310_vm15, %vm1318_vm0 }
 0x355   : > { %v1391_v26 = vld.sshfl [vmem:[#allocation1 + $0x10] sm:$0xff pattern:$0x75316420]  ;;  %v1242_v58 = vadd.f32 %v3864_v24, %v1222_v22  ;;  %v1243_v43 = vadd.f32 %v3864_v24, %v1223_v31  ;;  %v1304_v35 = vadd.s32 7, %v3859_v4  ;;  %v1337_v45 = vsel %vm3992_vm1, %v1288_v28, 0.0 }
 0x356   : > { %v1390_v44 = vld.sshfl [vmem:[#allocation1] sm:$0xff pattern:$0x75316420]  ;;  %1389 = vst [vmem:[#allocation1 + $0x31] ss:$2 sm:$0xff] %v1363_v23  ;;  %v1253_v9 = vmax.f32 %v1237_v34, 0.0  ;;  %v1289_v63 = vmul.f32 %v3901_v21, %v1271_v40  ;;  %v1291_v3 = vmul.f32 %v3901_v21, %v1273_v18 }
 0x357   : > { %2168 = vmatmul.msk.f32.vlgmr.msra.gmra.mxu0 %vm1418_vm6, %v1390_v44  ;;  %1394 = vst [vmem:[#allocation1] ss:$2 sm:$0xff] %v1334_v47  ;;  %v1364_v59 = vrot.slane %v1335_v37, 4  ;;  %v1259_v5 = vmax.f32 %v1243_v43, 0.0  ;;  %v1258_v24 = vmax.f32 %v1242_v58, 0.0  ;;  %v1261_v60 = vmax.f32 %v3957_v49, 0.0 }
 0x358   : > { %1395 = vst [vmem:[#allocation1 + $0x1] ss:$2 sm:$0xff] %v1335_v37  ;;  %v1269_v53 = vmin.f32 %v1253_v9, 6.0  ;;  %v1365_v42 = vrot.slane %v1337_v45, 4  ;;  %v1303_v51 = vadd.s32 6, %v3859_v4  ;;  %v1276_v7 = vmin.f32 %v1260_v38, 6.0 }
 0x359   : > { %1396 = vst [vmem:[#allocation1 + $0x10] ss:$2 sm:$0xff] %v1364_v59  ;;  %vm1312_vm3 = vcmp.ge.s32.totalorder %v1304_v35, 0  ;;  %v1339_v48 = vsel %vm4004_vm2, %v1290_v16, 0.0  ;;  %v1275_v1 = vmin.f32 %v1259_v5, 6.0  ;;  %vm1320_vm4 = vcmp.lt.s32.totalorder %v1304_v35, 8 }
 0x35a   : > { %v1338_v10 = vsel %vm3992_vm1, %v1289_v63, 0.0  ;;  %v1366_v14 = vrot.slane %v1339_v48, 4  ;;  %v1392_v2 = vld.sshfl [vmem:[#allocation1 + $0x20] sm:$0xff pattern:$0x75316420]  ;;  %v1287_v25 = vmul.f32 %v3901_v21, %v1269_v53  ;;  %v1274_v30 = vmin.f32 %v1258_v24, 6.0  ;;  %vm4023_vm8 = vmand %vm1312_vm3, %vm1320_vm4 }
 0x35b   : > { %1398 = vst [vmem:[#allocation1 + $0x20] ss:$2 sm:$0xff] %v1337_v45  ;;  %v1277_v32 = vmin.f32 %v1261_v60, 6.0  ;;  %v1340_v4 = vsel %vm4004_vm2, %v1291_v3, 0.0  ;;  %vm1311_vm5 = vcmp.ge.s32.totalorder %v1303_v51, 0  ;;  %v1294_v19 = vmul.f32 %v3896_v57, %v1276_v7 }
 0x35c   : > { %1399 = vst [vmem:[#allocation1 + $0x21] ss:$2 sm:$0xff] %v1365_v42  ;;  %v1293_v36 = vmul.f32 %v3901_v21, %v1275_v1  ;;  %vm1319_vm7 = vcmp.lt.s32.totalorder %v1303_v51, 8  ;;  %v1336_v61 = vsel %vm3971_vm12, %v1287_v25, 0.0  ;;  %v1292_v62 = vmul.f32 %v3896_v57, %v1274_v30 }
 0x35d   : > { %v1393_v8 = vld.sshfl [vmem:[#allocation1 + $0x30] sm:$0xff pattern:$0x75316420]  ;;  %v1295_v0 = vmul.f32 %v3901_v21, %v1277_v32  ;;  %vm1327_vm9 = vmand %vm1311_vm5, %vm1319_vm7  ;;  %v1343_v11 = vsel %vm4023_vm8, %v1294_v19, 0.0  ;;  %1397 = vst [vmem:[#allocation1 + $0x11] ss:$2 sm:$0xff] %v1336_v61 }
 0x35e   : > { %1400 = vst [vmem:[#allocation1 + $0x30] ss:$2 sm:$0xff] %v1338_v10  ;;  %v1342_v12 = vsel %vm1327_vm9, %v1293_v36, 0.0  ;;  %v1368_v44 = vrot.slane %v1343_v11, 4  ;;  %v1341_v49 = vsel %vm1327_vm9, %v1292_v62, 0.0  ;;  %vm1582_vm10 = vcmask 388096  }
 0x35f   : > { %2169 = vmatmul.msk.f32.gmra.mxu0 %vm1418_vm6, %v1391_v26  ;;  %v1402_v56 = vld.sshfl [vmem:[#allocation1] sm:$0xff pattern:$0x75316420]  ;;  %1401 = vst [vmem:[#allocation1 + $0x31] ss:$2 sm:$0xff] %v1339_v48  ;;  %v1344_v46 = vsel %vm4023_vm8, %v1295_v0, 0.0 }
 0x360   : > { %1406 = vst [vmem:[#allocation1] ss:$2 sm:$0xff] %v1366_v14  ;;  %v1367_v57 = vrot.slane %v1341_v49, 4  ;;  %v4063_v30 = vmov 0.0   ;;  %v4065_v32 = vmov 0.0  }
 0x361   : > { %1407 = vst [vmem:[#allocation1 + $0x1] ss:$2 sm:$0xff] %v1340_v4  ;;  %v4067_v4 = vmov 0.0  }
 0x363   : > { %v1404_v41 = vld.sshfl [vmem:[#allocation1 + $0x20] sm:$0xff pattern:$0x75316420] }
 0x364   : > { %2174 = vmatmul.msk.f32.vlgmr.msra.gmra.mxu2 %vm1418_vm6, %v1404_v41  ;;  %1410 = vst [vmem:[#allocation1 + $0x20] ss:$2 sm:$0xff] %v1342_v12  ;;  %v1403_v21 = vld.sshfl [vmem:[#allocation1 + $0x10] sm:$0xff pattern:$0x75316420] }
 0x365   : > { %1411 = vst [vmem:[#allocation1 + $0x21] ss:$2 sm:$0xff] %v1343_v11  ;;  %2173 = vmatmul.msk.f32.vlgmr.msra.gmra.mxu1 %vm1418_vm6, %v1403_v21 }
 0x366   : > { %v1405_v29 = vld.sshfl [vmem:[#allocation1 + $0x30] sm:$0xff pattern:$0x75316420]  ;;  %1408 = vst [vmem:[#allocation1 + $0x10] ss:$2 sm:$0xff] %v1341_v49 }
 0x367   : > { %2170 = vmatmul.msk.f32.gmra.mxu0 %vm1418_vm6, %v1392_v2  ;;  %1412 = vst [vmem:[#allocation1 + $0x30] ss:$2 sm:$0xff] %v1368_v44  ;;  %2175 = vmatmul.msk.f32.vlgmr.msra.gmra.mxu3 %vm1418_vm6, %v1405_v29 }
 0x368   : > { %1413 = vst [vmem:[#allocation1 + $0x31] ss:$2 sm:$0xff] %v1344_v46  ;;  %v1414_v33 = vld.sshfl [vmem:[#allocation1] sm:$0xff pattern:$0x75316420] }
 0x369   : > { %1409 = vst [vmem:[#allocation1 + $0x11] ss:$2 sm:$0xff] %v1367_v57 }
 0x36c   : > { %v1416_v27 = vld.sshfl [vmem:[#allocation1 + $0x20] sm:$0xff pattern:$0x75316420] }
 0x36f   : > { %2171 = vmatmul.msk.f32.gmra.mxu0 %vm1418_vm6, %v1393_v8  ;;  %2176 = vmatmul.msk.f32.gmra.mxu3 %vm1418_vm6, %v1414_v33  ;;  %v1417_v52 = vld.sshfl [vmem:[#allocation1 + $0x30] sm:$0xff pattern:$0x75316420]  ;;  %v4061_v8 = vmov 0.0  }
 0x370   : > { %v1415_v55 = vld.sshfl [vmem:[#allocation1 + $0x10] sm:$0xff pattern:$0x75316420] }
 0x377   : > { %2172 = vmatmul.msk.f32.gmra.mxu0 %vm1418_vm6, %v1402_v56  ;;  %2177 = vmatmul.msk.f32.gmra.mxu3 %vm1418_vm6, %v1415_v55 }
 0x37f   : > { %2178 = vmatmul.msk.f32.gmra.mxu3 %vm1418_vm6, %v1416_v27 }
 0x387   : > { %2179 = vmatmul.msk.f32.gmra.mxu3 %vm1418_vm6, %v1417_v52 }
 0x3d4   : > { %v1460_v13 = vpop.f32.mrf.mxu0 }
 0x3d5   : > { %v1508_v28 = vrot.slane %v1460_v13, 4  ;;  %1520 = vst [vmem:[#allocation1] ss:$2 sm:$0xff] %v1460_v13 }
 0x3d7   : > { %1522 = vst [vmem:[#allocation1 + $0x1] ss:$2 sm:$0xff] %v1508_v28 }
 0x3dc   : > { %v1463_v15 = vpop.f32.mrf.mxu0 }
 0x3dd   : > { %v1509_v6 = vrot.slane %v1463_v15, 4  ;;  %1524 = vst [vmem:[#allocation1 + $0x10] ss:$2 sm:$0xff] %v1463_v15 }
 0x3de   : > { %v1525_v20 = vld.sshfl [vmem:[#allocation1] sm:$0xff pattern:$0x75316420] }
 0x3df   : > { %1528 = vst [vmem:[#allocation1 + $0x20] ss:$2 sm:$0xff] %v1509_v6 }
 0x3e0   : > { %1581 = vst.msk [vmem:[#allocation2] sm:$0xff] %vm1418_vm6, %v1525_v20 }
 0x3e2   : > { %v1475_v31 = vpop.f32.mrf.mxu1 }
 0x3e3   : > { %v1513_v34 = vrot.slane %v1475_v31, 4 }
 0x3e4   : > { %v1466_v22 = vpop.f32.mrf.mxu0  ;;  %v1526_v54 = vld.sshfl [vmem:[#allocation1 + $0x10] sm:$0xff pattern:$0x75316420] }
 0x3e5   : > { %v1510_v23 = vrot.slane %v1466_v22, 4  ;;  %1530 = vst [vmem:[#allocation1 + $0x21] ss:$2 sm:$0xff] %v1466_v22 }
 0x3e6   : > { %1583 = vst.msk [vmem:[#allocation2 + $0x8] sm:$0xf] %vm1582_vm10, %v1526_v54 }
 0x3e7   : > { %1532 = vst [vmem:[#allocation1 + $0x30] ss:$2 sm:$0xff] %v1510_v23  ;;  %v1478_v18 = vpop.f32.mrf.mxu2 }
 0x3e8   : > { %v1514_v58 = vrot.slane %v1478_v18, 4 }
 0x3ea   : > { %v1481_v26 = vpop.f32.mrf.mxu3 }
 0x3eb   : > { %v1515_v63 = vrot.slane %v1481_v26, 4 }
 0x3ec   : > { %v1469_v38 = vpop.f32.mrf.mxu0  ;;  %v1533_v40 = vld.sshfl [vmem:[#allocation1 + $0x20] sm:$0xff pattern:$0x75316420] }
 0x3ed   : > { %v1511_v47 = vrot.slane %v1469_v38, 4  ;;  %1535 = vst [vmem:[#allocation1] ss:$2 sm:$0xff] %v1469_v38 }
 0x3ee   : > { %v1534_v37 = vld.sshfl [vmem:[#allocation1 + $0x30] sm:$0xff pattern:$0x75316420]  ;;  %1584 = vst.msk [vmem:[#allocation2 + $0x10] sm:$0xff] %vm1418_vm6, %v1533_v40 }
 0x3ef   : > { %1536 = vst [vmem:[#allocation1 + $0x1] ss:$2 sm:$0xff] %v1511_v47 }
 0x3f0   : > { %1541 = vst [vmem:[#allocation1 + $0x21] ss:$2 sm:$0xff] %v1475_v31 }
 0x3f1   : > { %1542 = vst [vmem:[#allocation1 + $0x30] ss:$2 sm:$0xff] %v1513_v34 }
 0x3f2   : > { %1585 = vst.msk [vmem:[#allocation2 + $0x18] sm:$0xf] %vm1582_vm10, %v1534_v37  ;;  %v1484_v45 = vpop.f32.mrf.mxu3 }
 0x3f3   : > { %v1516_v9 = vrot.slane %v1484_v45, 4 }
 0x3f4   : > { %v1472_v16 = vpop.f32.mrf.mxu0 }
 0x3f5   : > { %v1512_v39 = vrot.slane %v1472_v16, 4  ;;  %1537 = vst [vmem:[#allocation1 + $0x10] ss:$2 sm:$0xff] %v1472_v16 }
 0x3f6   : > { %v1538_v43 = vld.sshfl [vmem:[#allocation1] sm:$0xff pattern:$0x75316420] }
 0x3f7   : > { %1540 = vst [vmem:[#allocation1 + $0x20] ss:$2 sm:$0xff] %v1512_v39 }
 0x3f8   : > { %v1544_v35 = vld.sshfl [vmem:[#allocation1 + $0x30] sm:$0xff pattern:$0x75316420]  ;;  %1545 = vst [vmem:[#allocation1] ss:$2 sm:$0xff] %v1478_v18 }
 0x3f9   : > { %1589 = vst.msk [vmem:[#allocation2 + $0x38] sm:$0xf] %vm1582_vm10, %v1544_v35 }
 0x3fa   : > { %1546 = vst [vmem:[#allocation1 + $0x1] ss:$2 sm:$0xff] %v1514_v58  ;;  %v1487_v5 = vpop.f32.mrf.mxu3 }
 0x3fb   : > { %1586 = vst.msk [vmem:[#allocation2 + $0x20] sm:$0xff] %vm1418_vm6, %v1538_v43  ;;  %v1517_v53 = vrot.slane %v1487_v5, 4 }
 0x3fc   : > { %1552 = vst [vmem:[#allocation1 + $0x30] ss:$2 sm:$0xff] %v1516_v9  ;;  %v1539_v59 = vld.sshfl [vmem:[#allocation1 + $0x10] sm:$0xff pattern:$0x75316420] }
 0x3fd   : > { %1547 = vst [vmem:[#allocation1 + $0x10] ss:$2 sm:$0xff] %v1481_v26 }
 0x3fe   : > { %v1543_v50 = vld.sshfl [vmem:[#allocation1 + $0x20] sm:$0xff pattern:$0x75316420]  ;;  %1587 = vst.msk [vmem:[#allocation2 + $0x28] sm:$0xf] %vm1582_vm10, %v1539_v59 }
 0x3ff   : > { %1550 = vst [vmem:[#allocation1 + $0x20] ss:$2 sm:$0xff] %v1515_v63 }
 0x400   : > { %1588 = vst.msk [vmem:[#allocation2 + $0x30] sm:$0xff] %vm1418_vm6, %v1543_v50 }
 0x401   : > { %1551 = vst [vmem:[#allocation1 + $0x21] ss:$2 sm:$0xff] %v1484_v45  ;;  %v1548_v24 = vld.sshfl [vmem:[#allocation1] sm:$0xff pattern:$0x75316420] }
 0x402   : > { %1555 = vst [vmem:[#allocation1] ss:$2 sm:$0xff] %v1487_v5  ;;  %v1490_v51 = vpop.f32.mrf.mxu3 }
 0x403   : > { %1590 = vst.msk [vmem:[#allocation2 + $0x40] sm:$0xff] %vm1418_vm6, %v1548_v24  ;;  %v1554_v60 = vld.sshfl [vmem:[#allocation1 + $0x30] sm:$0xff pattern:$0x75316420]  ;;  %v1518_v48 = vrot.slane %v1490_v51, 4 }
 0x404   : > { %1556 = vst [vmem:[#allocation1 + $0x1] ss:$2 sm:$0xff] %v1517_v53  ;;  %v1549_v3 = vld.sshfl [vmem:[#allocation1 + $0x10] sm:$0xff pattern:$0x75316420] }
 0x405   : > { %1591 = vst.msk [vmem:[#allocation2 + $0x48] sm:$0xf] %vm1582_vm10, %v1549_v3 }
 0x406   : > { %1593 = vst.msk [vmem:[#allocation2 + $0x58] sm:$0xf] %vm1582_vm10, %v1554_v60 }
 0x407   : > { %1557 = vst [vmem:[#allocation1 + $0x10] ss:$2 sm:$0xff] %v1490_v51 }
 0x408   : > { %v1553_v42 = vld.sshfl [vmem:[#allocation1 + $0x20] sm:$0xff pattern:$0x75316420] }
 0x409   : > { %1592 = vst.msk [vmem:[#allocation2 + $0x50] sm:$0xff] %vm1418_vm6, %v1553_v42 }
 0x40a   : > { %1560 = vst [vmem:[#allocation1 + $0x20] ss:$2 sm:$0xff] %v1518_v48  ;;  %v1493_v10 = vpop.f32.mrf.mxu3 }
 0x40b   : > { %v1558_v7 = vld.sshfl [vmem:[#allocation1] sm:$0xff pattern:$0x75316420]  ;;  %v1519_v14 = vrot.slane %v1493_v10, 4  ;;  %1561 = vst [vmem:[#allocation1 + $0x21] ss:$2 sm:$0xff] %v1493_v10 }
 0x40c   : > { %1594 = vst.msk [vmem:[#allocation2 + $0x60] sm:$0xff] %vm1418_vm6, %v1558_v7 }
 0x40d   : > { %1562 = vst [vmem:[#allocation1 + $0x30] ss:$2 sm:$0xff] %v1519_v14 }
 0x40e   : > { %v1559_v1 = vld.sshfl [vmem:[#allocation1 + $0x10] sm:$0xff pattern:$0x75316420] }
 0x40f   : > { %1595 = vst.msk [vmem:[#allocation2 + $0x68] sm:$0xf] %vm1582_vm10, %v1559_v1 }
 0x412   : > { %v1563_v2 = vld.sshfl [vmem:[#allocation1 + $0x20] sm:$0xff pattern:$0x75316420] }
 0x413   : > { %1596 = vst.msk [vmem:[#allocation2 + $0x70] sm:$0xff] %vm1418_vm6, %v1563_v2 }
 0x414   : > { %v1564_v25 = vld.sshfl [vmem:[#allocation1 + $0x30] sm:$0xff pattern:$0x75316420] }
 0x415   : > { %1597 = vst.msk [vmem:[#allocation2 + $0x78] sm:$0xf] %vm1582_vm10, %v1564_v25 }
 0x416 LB: >> { %s2180_s16 = sshll.u32 %s2849_s29, 4  ;;  %s2857_s24 = smov 8   ;;  %s2849_s29 = sphi %s4069_s29, %s1603_s29   ;;  %v2845_v4 = vphi %v4067_v4, %v4418_v4   ;;  %v2841_v32 = vphi %v4065_v32, %v4417_v32   ;;  %v2837_v30 = vphi %v4063_v30, %v4416_v30   ;;  %v2833_v8 = vphi %v4061_v8, %v4415_v8  }
 0x417   : >> { %s1609_s26 = scalar_lea.vmem %s4319_s6, %s2180_s16  ;;  %s2858_s15 = smov 16  }
 0x418   : >> { %v4090_v19 = vld [vmem:[%s1609_s26] sm:$0xff]  ;;  %v2518_v0 = vld [vmem:[%s1609_s26 + $0x8] ss:$0 sm:$0xff]  ;;  %s2204_s11 = sshll.u32 %s2849_s29, 5  ;;  %s2859_s13 = smov 120  }
 0x419   : >> { %v1628_v56 = vperm.slane %v4090_v19, 1  ;;  %v1699_v36 = vperm.slane %v4090_v19, 4  ;;  %v1770_v17 = vperm.slane %v4090_v19, 7  ;;  %v1657_v61 = vperm.slane %v4090_v19, 2  ;;  %s4098_s20 = scalar_lea.vmem [#allocation2], %s2204_s11  ;;  %s2860_s16 = smov 112  }
 0x41a   : >> { %v1728_v62 = vperm.slane %v4090_v19, 5  ;;  %v1619_v14 = vperm.slane %v4090_v19, 0  ;;  %s1603_s29 = sadd.s32 1, %s2849_s29  }
 0x41b   : >> { %1630 = vrot.lane.b32.xlu0 %v1628_v56, %s2857_s24  ;;  %1701 = vrot.lane.b32.xlu1 %v1699_v36, %s2857_s24  ;;  %p1600_p7 = scmp.ge.s32.totalorder %s1603_s29, 3  }
 0x41c   : >> { %1772 = vrot.lane.b32.xlu2 %v1770_v17, %s2857_s24  ;;  %v4101_v11 = vld [vmem:[%s4098_s20 + $0x20] sm:$0xff]  ;;  %v4104_v12 = vld [vmem:[%s4098_s20 + $0x10] sm:$0xff]  ;;  %s2205_s28 = sshll.u32 (%p1600_p7), %s2745_s23, 6  ;;  %s2861_s29 = smov (%p1600_p7), 112   ;;  %vm1879_vm6 = vcmask (%p1600_p7), 261120   ;;  %vm1958_vm11 = vcmask (%p1600_p7), 523264  }
 0x41d   : >> { %v4107_v44 = vld [vmem:[%s4098_s20] sm:$0xff]  ;;  %v4116_v57 = vld [vmem:[%s4098_s20 + $0x30] sm:$0xff]  ;;  %s2035_s24 = scalar_lea.vmem (%p1600_p7), %s381_s8, %s2205_s28 [#allocation3]  ;;  %s4420_s28 = sld [smem:[#allocation23_spill]] (%p1600_p7) }
 0x41e   : >> { %v4125_v13 = vld [vmem:[%s4098_s20 + $0x2] sm:$0xff]  ;;  %v4134_v20 = vld [vmem:[%s4098_s20 + $0x32] sm:$0xff]  ;;  %v1620_v2 = vmul.f32 %v1619_v14, %v4107_v44  ;;  %s4421_s11 = sld [smem:[#allocation24_spill]] (%p1600_p7) }
 0x41f   : >> { %v4137_v22 = vld [vmem:[%s4098_s20 + $0x22] sm:$0xff]  ;;  %v4140_v54 = vld [vmem:[%s4098_s20 + $0x12] sm:$0xff]  ;;  %s4422_s0 = sld [smem:[#allocation9_spill]] (%p1600_p7) }
 0x420   : >> { %v4155_v18 = vld [vmem:[%s4098_s20 + $0x14] sm:$0xff]  ;;  %v1757_v16 = vld [vmem:[%s4098_s20 + $0x4] sm:$0xff]  ;;  %v1624_v36 = vadd.f32 %v2845_v4, %v1620_v2 }
 0x421   : >> { %v4164_v45 = vld [vmem:[%s4098_s20 + $0x34] sm:$0xff]  ;;  %v4167_v9 = vld [vmem:[%s4098_s20 + $0x24] sm:$0xff] }
 0x423   : >> { %1659 = vrot.lane.b32.xlu0 %v1657_v61, %s2858_s15  ;;  %1730 = vrot.lane.b32.xlu1 %v1728_v62, %s2858_s15  ;;  %v1690_v62 = vperm.slane %v4090_v19, 3 }
 0x424   : >> { %1801 = vrot.lane.b32.xlu2 %v2518_v0, %s2858_s15  ;;  %v1623_v0 = vmul.f32 %v1619_v14, %v4116_v57  ;;  %s4423_s15 = sld [smem:[#allocation26_spill]] (%p1600_p7) }
 0x425   : > { %s2199_s10 = sshll.u32 (%p1600_p7), %s4422_s0, 3 }
 0x476   : >> { %v1773_v26 = vpop.permute.xlu2 %1772 }
 0x477   : >> { %v1776_v39 = vmul.f32 %v1773_v26, %v4155_v18  ;;  %v1775_v58 = vmul.f32 %v1773_v26, %v1757_v16  ;;  %v1778_v63 = vmul.f32 %v1773_v26, %v4164_v45  ;;  %v1777_v50 = vmul.f32 %v1773_v26, %v4167_v9 }
 0x47e   : >> { %v1802_v35 = vpop.permute.xlu2 %1801 }
 0x47f   : >> { %v1804_v59 = vmul.f32 %v1802_v35, %v1757_v16  ;;  %v1807_v5 = vmul.f32 %v1802_v35, %v4164_v45  ;;  %v1806_v24 = vmul.f32 %v1802_v35, %v4167_v9  ;;  %v1805_v53 = vmul.f32 %v1802_v35, %v4155_v18 }
 0x48d   : >> { %v1631_v49 = vpop.permute.xlu0 %1630  ;;  %v1702_v52 = vpop.permute.xlu1 %1701 }
 0x48e   : >> { %v1635_v41 = vmul.f32 %v1631_v49, %v4101_v11  ;;  %v1634_v46 = vmul.f32 %v1631_v49, %v4104_v12  ;;  %v1633_v29 = vmul.f32 %v1631_v49, %v4107_v44  ;;  %v1636_v27 = vmul.f32 %v1631_v49, %v4116_v57 }
 0x48f   : >> { %v1704_v28 = vmul.f32 %v1702_v52, %v4125_v13  ;;  %v1707_v23 = vmul.f32 %v1702_v52, %v4134_v20  ;;  %v1706_v38 = vmul.f32 %v1702_v52, %v4137_v22  ;;  %v1705_v40 = vmul.f32 %v1702_v52, %v4140_v54 }
 0x490   : >> { %1645 = vrot.lane.b32.xlu2 %v1635_v41, %s2859_s13  ;;  %1643 = vrot.lane.b32.xlu1 %v1634_v46, %s2859_s13  ;;  %v1691_v41 = vmul.f32 %v1690_v62, %v4125_v13 }
 0x491   : >> { %1641 = vrot.lane.b32.xlu0 %v1633_v29, %s2859_s13 }
 0x495   : >> { %v1660_v21 = vpop.permute.xlu0 %1659  ;;  %v1731_v47 = vpop.permute.xlu1 %1730 }
 0x496   : >> { %v1663_v33 = vmul.f32 %v1660_v21, %v4104_v12  ;;  %v1662_v55 = vmul.f32 %v1660_v21, %v4107_v44  ;;  %v1665_v15 = vmul.f32 %v1660_v21, %v4116_v57  ;;  %v1664_v6 = vmul.f32 %v1660_v21, %v4101_v11 }
 0x497   : >> { %v1735_v31 = vmul.f32 %v1731_v47, %v4137_v22  ;;  %v1734_v37 = vmul.f32 %v1731_v47, %v4140_v54  ;;  %v1733_v34 = vmul.f32 %v1731_v47, %v4125_v13  ;;  %v1736_v43 = vmul.f32 %v1731_v47, %v4134_v20 }
 0x498   : >> { %1672 = vrot.lane.b32.xlu2 %v1663_v33, %s2860_s16  ;;  %1670 = vrot.lane.b32.xlu1 %v1662_v55, %s2860_s16  ;;  %v1627_v21 = vadd.f32 %v2833_v8, %v1623_v0  ;;  %v1622_v33 = vmul.f32 %v1619_v14, %v4101_v11  ;;  %v1621_v44 = vmul.f32 %v1619_v14, %v4104_v12  ;;  %v1761_v13 = vperm.slane %v4090_v19, 6  ;;  %v1853_v0 = vld [vmem:[%s4322_s9 + $0x8] sm:$0xff] (%p1600_p7) }
 0x499   : >> { %1647 = vrot.lane.b32.xlu0 %v1636_v27, %s2859_s13  ;;  %v1694_v57 = vmul.f32 %v1690_v62, %v4134_v20 }
 0x49a   : >> { %v1626_v52 = vadd.f32 %v2837_v30, %v1622_v33 }
 0x4a0   : >> { %1712 = vrot.lane.b32.xlu2 %v1704_v28, %s2859_s13  ;;  %1676 = vrot.lane.b32.xlu1 %v1665_v15, %s2860_s16  ;;  %v1625_v28 = vadd.f32 %v2841_v32, %v1621_v44  ;;  %v1692_v32 = vmul.f32 %v1690_v62, %v4140_v54  ;;  %v1764_v54 = vmul.f32 %v1761_v13, %v4167_v9  ;;  %v1854_v9 = vld [vmem:[%s4322_s9 + $0x10] sm:$0xff] (%p1600_p7) }
 0x4a1   : >> { %1674 = vrot.lane.b32.xlu0 %v1664_v6, %s2860_s16 }
 0x4a8   : >> { %1718 = vrot.lane.b32.xlu2 %v1707_v23, %s2859_s13  ;;  %1716 = vrot.lane.b32.xlu1 %v1706_v38, %s2859_s13 }
 0x4a9   : >> { %1714 = vrot.lane.b32.xlu0 %v1705_v40, %s2859_s13  ;;  %v1762_v40 = vmul.f32 %v1761_v13, %v1757_v16  ;;  %v1765_v16 = vmul.f32 %v1761_v13, %v4164_v45 }
 0x4b0   : >> { %1745 = vrot.lane.b32.xlu2 %v1735_v31, %s2860_s16  ;;  %1743 = vrot.lane.b32.xlu1 %v1734_v37, %s2860_s16  ;;  %v1693_v37 = vmul.f32 %v1690_v62, %v4137_v22  ;;  %v1763_v22 = vmul.f32 %v1761_v13, %v4155_v18  ;;  %v1855_v18 = vld [vmem:[%s4322_s9 + $0x18] sm:$0xff] (%p1600_p7)  ;;  %v2187_v62 = vld [vmem:[%s2035_s24 + $0x64] sm:$0xff] (%p1600_p7) }
 0x4b1   : >> { %1741 = vrot.lane.b32.xlu0 %v1733_v34, %s2860_s16  ;;  %1941 = vmatpush.msrb.mxu2 (%p1600_p7), %v1855_v18 }
 0x4b3   : > { %1942 = vmatpush.msrb.mxu2 (%p1600_p7), %v1854_v9 }
 0x4b5   : > { %1943 = vmatpush.msrb.mxu2 (%p1600_p7), %v1853_v0 }
 0x4b8   : >> { %1785 = vrot.lane.b32.xlu2 %v1776_v39, %s2859_s13  ;;  %1783 = vrot.lane.b32.xlu1 %v1775_v58, %s2859_s13 }
 0x4b9   : >> { %1747 = vrot.lane.b32.xlu0 %v1736_v43, %s2860_s16 }
 0x4c0   : >> { %1812 = vrot.lane.b32.xlu2 %v1804_v59, %s2860_s16  ;;  %1789 = vrot.lane.b32.xlu1 %v1778_v63, %s2859_s13 }
 0x4c1   : >> { %1787 = vrot.lane.b32.xlu0 %v1777_v50, %s2859_s13  ;;  %s1978_s13 = sshll.u32 (%p1600_p7), %s3046_s14, 4  ;;  %s1979_s13 = int_to_ptr.vmem [resolvable:$true] %s1978_s13 }
 0x4c8   : >> { %1818 = vrot.lane.b32.xlu2 %v1807_v5, %s2860_s16  ;;  %1816 = vrot.lane.b32.xlu1 %v1806_v24, %s2860_s16 }
 0x4c9   : >> { %1814 = vrot.lane.b32.xlu0 %v1805_v53, %s2860_s16  ;;  %s4419_s16 = sld [smem:[#allocation25_spill]] (%p1600_p7) }
 0x4cf   : > { %v1864_v33 = vld [vmem:[%s4419_s16 + $0x8] sm:$0xff] (%p1600_p7)  ;;  %v1863_v44 = vld [vmem:[%s4419_s16] sm:$0xff] (%p1600_p7) }
 0x4d0   : > { %1875 = vrot.lane.b32.xlu1 (%p1600_p7), %v2187_v62, %s2861_s29 }
 0x4ea   : >> { %v1646_v60 = vpop.permute.xlu2 %1645 }
 0x4eb   : >> { %v1655_v47 = vadd.f32 %v1646_v60, %v1626_v52 }
 0x4f2   : >> { %v1673_v3 = vpop.permute.xlu2 %1672 }
 0x4fa   : >> { %v1713_v42 = vpop.permute.xlu2 %1712 }
 0x502   : >> { %v1644_v51 = vpop.permute.xlu1 %1643  ;;  %v1719_v10 = vpop.permute.xlu2 %1718 }
 0x503   : >> { %v1642_v7 = vpop.permute.xlu0 %1641  ;;  %v1654_v11 = vadd.f32 %v1644_v51, %v1625_v28 }
 0x504   : >> { %v1653_v61 = vadd.f32 %v1642_v7, %v1624_v36 }
 0x505   : >> { %v1683_v30 = vadd.f32 %v1673_v3, %v1654_v11 }
 0x507   : >> { %v1696_v63 = vadd.f32 %v1692_v32, %v1683_v30 }
 0x50a   : >> { %v1671_v48 = vpop.permute.xlu1 %1670  ;;  %v1746_v17 = vpop.permute.xlu2 %1745 }
 0x50b   : >> { %v1648_v1 = vpop.permute.xlu0 %1647  ;;  %v1682_v46 = vadd.f32 %v1671_v48, %v1653_v61  ;;  %v2185_v61 = vld [vmem:[%s2035_s24 + $0x44] sm:$0xff] (%p1600_p7) }
 0x50c   : >> { %v1656_v4 = vadd.f32 %v1648_v1, %v1627_v21  ;;  %1871 = vrot.lane.b32.xlu0 (%p1600_p7), %v2185_v61, %s2861_s29 }
 0x50d   : >> { %v1695_v55 = vadd.f32 %v1691_v41, %v1682_v46  ;;  %v2520_v41 = vld [vmem:[%s4421_s11] ss:$0 sm:$0xff] (%p1600_p7)  ;;  %v1865_v46 = vld [vmem:[%s4419_s16 + $0x10] sm:$0xff] (%p1600_p7) }
 0x50f   : >> { %v1724_v38 = vadd.f32 %v1713_v42, %v1695_v55 }
 0x512   : >> { %v1677_v25 = vpop.permute.xlu1 %1676  ;;  %v1786_v27 = vpop.permute.xlu2 %1785 }
 0x513   : >> { %v1675_v56 = vpop.permute.xlu0 %1674  ;;  %v1685_v6 = vadd.f32 %v1677_v25, %v1656_v4 }
 0x514   : >> { %v1684_v31 = vadd.f32 %v1675_v56, %v1655_v47 }
 0x515   : >> { %v1698_v12 = vadd.f32 %v1694_v57, %v1685_v6 }
 0x516   : >> { %v1697_v19 = vadd.f32 %v1693_v37, %v1684_v31 }
 0x517   : >> { %v1727_v43 = vadd.f32 %v1719_v10, %v1698_v12 }
 0x51a   : >> { %v1717_v49 = vpop.permute.xlu1 %1716  ;;  %v1813_v26 = vpop.permute.xlu2 %1812 }
 0x51b   : >> { %v1715_v29 = vpop.permute.xlu0 %1714  ;;  %v1726_v50 = vadd.f32 %v1717_v49, %v1697_v19  ;;  %v2519_v49 = vld [vmem:[%s4420_s28] ss:$0 sm:$0xff] (%p1600_p7) }
 0x51c   : >> { %v1725_v5 = vadd.f32 %v1715_v29, %v1696_v63  ;;  %v1852_v29 = vld [vmem:[%s4322_s9] sm:$0xff] (%p1600_p7) }
 0x51d   : >> { %v1755_v3 = vadd.f32 %v1746_v17, %v1726_v50  ;;  %v1866_v17 = vld [vmem:[%s4419_s16 + $0x18] sm:$0xff] (%p1600_p7)  ;;  %1944 = vmatpush.msrb.mxu2 (%p1600_p7), %v1852_v29 }
 0x51e   : > { %1900 = vmatpush.msrb.mxu1 (%p1600_p7), %v1866_v17 }
 0x51f   : >> { %v1768_v10 = vadd.f32 %v1764_v54, %v1755_v3 }
 0x520   : > { %1901 = vmatpush.msrb.mxu1 (%p1600_p7), %v1865_v46 }
 0x522   : >> { %v1744_v15 = vpop.permute.xlu1 %1743  ;;  %v1819_v7 = vpop.permute.xlu2 %1818  ;;  %1902 = vmatpush.msrb.mxu1 (%p1600_p7), %v1864_v33 }
 0x523   : >> { %v1742_v23 = vpop.permute.xlu0 %1741  ;;  %v1754_v53 = vadd.f32 %v1744_v15, %v1725_v5 }
 0x524   : >> { %v1753_v8 = vadd.f32 %v1742_v23, %v1724_v38  ;;  %1903 = vmatpush.msrb.mxu1 (%p1600_p7), %v1863_v44 }
 0x525   : >> { %v1767_v1 = vadd.f32 %v1763_v22, %v1754_v53 }
 0x526   : >> { %v1766_v34 = vadd.f32 %v1762_v40, %v1753_v8 }
 0x527   : >> { %v1796_v45 = vadd.f32 %v1786_v27, %v1767_v1  ;;  %v2186_v27 = vld [vmem:[%s2035_s24 + $0x54] sm:$0xff] (%p1600_p7) }
 0x528   : > { %1873 = vrot.lane.b32.xlu0 (%p1600_p7), %v2186_v27, %s2861_s29 }
 0x52a   : >> { %v1784_v39 = vpop.permute.xlu1 %1783 }
 0x52b   : >> { %v1795_v20 = vadd.f32 %v1784_v39, %v1766_v34  ;;  %v1748_v58 = vpop.permute.xlu0 %1747 }
 0x52c   : >> { %v1756_v59 = vadd.f32 %v1748_v58, %v1727_v43 }
 0x52d   : >> { %v1824_v35 = vadd.f32 %v1813_v26, %v1795_v20  }
 0x52e   : >> { %v1769_v24 = vadd.f32 %v1765_v16, %v1756_v59 }
 0x52f   : >> { %v4418_v4 = vmov %v1824_v35  ;;  %v1832_v21 = vmul.f32 (%p1600_p7), %v2519_v49, %v1824_v35 }
 0x530   : > { %v2188_v4 = vld [vmem:[%s2035_s24 + $0x74] sm:$0xff] (%p1600_p7)  ;;  %s1975_s24 = sadd.s32 (%p1600_p7), %s2199_s10, %s3042_s25  ;;  %s4425_s25 = sand.u32 (%p1600_p7), 1, %s2725_s18  }
 0x531   : > { %v1840_v55 = vadd.f32 (%p1600_p7), %v2520_v41, %v1832_v21  ;;  %1877 = vrot.lane.b32.xlu1 (%p1600_p7), %v2188_v4, %s2861_s29  ;;  %s2200_s29 = sshll.u32 (%p1600_p7), %s1975_s24, 3  ;;  %s1964_s30 = scalar_lea.sflag (%p1600_p7), [#allocation5], %s4425_s25 }
 0x532   : >> { %v1790_v60 = vpop.permute.xlu1 %1789  ;;  %s1977_s20 = scalar_lea.hbm (%p1600_p7), %s4423_s15, %s2200_s29  ;;  %s2571_s24 = scalar_lea.hbm (%p1600_p7), %s4423_s15, 128 }
 0x533   : >> { %v1798_v42 = vadd.f32 %v1790_v60, %v1769_v24  ;;  %v1788_v51 = vpop.permute.xlu0 %1787  ;;  %v1844_v52 = vmax.f32 (%p1600_p7), %v1840_v55, 0.0  ;;  %s1980_s23 = sshll.u32 (%p1600_p7), %s1977_s20, 4  ;;  %s1981_s23 = int_to_ptr.hbm [resolvable:$true] %s1980_s23 }
 0x534   : >> { %v1797_v14 = vadd.f32 %v1788_v51, %v1768_v10  ;;  %s2565_s12 = sshra.s32 (%p1600_p7), %s1981_s23, 4  ;;  %s2566_s12 = int_to_ptr.hbm [resolvable:$true] %s2565_s12 }
 0x535   : >> { %v1827_v48 = vadd.f32 %v1819_v7, %v1798_v42   ;;  %v1848_v28 = vmin.f32 (%p1600_p7), %v1844_v52, 6.0  ;;  %s2567_s8 = scalar_lea.hbm (%p1600_p7), %s2566_s12, 32  ;;  %p2572_p13 = scmp.lt.s32.totalorder (%p1600_p7), %s2566_s12, %s4423_s15 }
 0x536   : > { %p2568_p9 = scmp.ne.s32.totalorder (%p1600_p7), %s2566_s12, %s2567_s8  ;;  %p2573_p0 = scmp.lt.s32.totalorder (%p1600_p7), %s2571_s24, %s2567_s8 }
 0x537   : >> { %v4415_v8 = vmov %v1827_v48  ;;  %2193 = vmatmul.msk.f32.vlgmr.msrb.gmra.mxu2 (%p1600_p7), %vm1879_vm6, %v1848_v28  ;;  %v1835_v11 = vmul.f32 (%p1600_p7), %v2519_v49, %v1827_v48 }
 0x538   : > { %p2569_p10 = pnand (%p1600_p7), %p2568_p9, %p3006_p12  ;;  %p2574_p1 = por (%p1600_p7), %p2573_p0, %p2572_p13 }
 0x539   : > { %v1843_v47 = vadd.f32 (%p1600_p7), %v2520_v41, %v1835_v11 }
 0x53a   : >> { %v1817_v2 = vpop.permute.xlu1 %1816  ;;  %1602 = sbr.rel (!%p1600_p7) target bundleno = 1046 (0x416), region = 151  ;;  %p2570_p11 = pneg (%p1600_p7), %p2569_p10 }
 0x53b   : >> { %v1826_v25 = vadd.f32 %v1817_v2, %v1797_v14   ;;  %v1815_v56 = vpop.permute.xlu0 %1814  ;;  %v1847_v12 = vmax.f32 (%p1600_p7), %v1843_v47, 0.0 }
 0x53c   : >> { %v1825_v36 = vadd.f32 %v1815_v56, %v1796_v45   ;;  %p2575_p4 = pnand (%p1600_p7), %p2574_p1, %p2570_p11 }
 0x53d   : >> { %v4416_v30 = vmov %v1826_v25  ;;  %v1834_v23 = vmul.f32 (%p1600_p7), %v2519_v49, %v1826_v25  ;;  %v1851_v31 = vmin.f32 (%p1600_p7), %v1847_v12, 6.0 }
 0x53e   : >> { %v4417_v32 = vmov %v1825_v36  ;;  %v1833_v15 = vmul.f32 (%p1600_p7), %v2519_v49, %v1825_v36 }
 0x53f   : > { %v1842_v38 = vadd.f32 %v2520_v41, %v1834_v23 }
 0x540   : > { %v1841_v57 = vadd.f32 %v2520_v41, %v1833_v15 }
 0x541   : > { %v1846_v8 = vmax.f32 %v1842_v38, 0.0 }
 0x542   : > { %v1845_v6 = vmax.f32 %v1841_v57, 0.0  ;;  %v1876_v30 = vpop.permute.xlu1 %1875 }
 0x543   : > { %v1850_v40 = vmin.f32 %v1846_v8, 6.0 }
 0x544   : > { %v1849_v13 = vmin.f32 %v1845_v6, 6.0 }
 0x546   : > { %2194 = vmatmul.msk.f32.gmra.mxu2 %vm1879_vm6, %v1849_v13 }
 0x54e   : > { %2195 = vmatmul.msk.f32.gmra.mxu2 %vm1879_vm6, %v1850_v40 }
 0x556   : > { %2196 = vmatmul.msk.f32.gmra.mxu2 %vm1879_vm6, %v1851_v31 }
 0x57e   : > { %v1872_v37 = vpop.permute.xlu0 %1871 }
 0x57f   : > { %2189 = vmatmul.msk.f32.vlgmr.msrb.gmra.mxu1 %vm1879_vm6, %v1872_v37 }
 0x59a   : > { %v1874_v34 = vpop.permute.xlu0 %1873 }
 0x59b   : > { %2190 = vmatmul.msk.f32.gmra.mxu1 %vm1879_vm6, %v1874_v34 }
 0x5a3   : > { %2191 = vmatmul.msk.f32.gmra.mxu1 %vm1879_vm6, %v1876_v30  ;;  %v1878_v26 = vpop.permute.xlu1 %1877 }
 0x5ab   : > { %2192 = vmatmul.msk.f32.gmra.mxu1 %vm1879_vm6, %v1878_v26 }
 0x5ba   : > { %v1946_v32 = vpop.f32.mrf.mxu2 }
 0x5c9   : > { %v1949_v58 = vpop.f32.mrf.mxu2 }
 0x5d1   : > { %v1952_v35 = vpop.f32.mrf.mxu2 }
 0x5d9   : > { %v1955_v63 = vpop.f32.mrf.mxu2 }
 0x5fc   : > { %v1905_v39 = vpop.f32.mrf.mxu1 }
 0x5fd   : > { %v1947_v20 = vadd.f32 %v1946_v32, %v1905_v39 }
 0x5ff   : > { %1959 = vst.msk [vmem:[%s3046_s14] sm:$0xff] %vm1958_vm11, %v1947_v20 }
 0x618   : > { %v1908_v43 = vpop.f32.mrf.mxu1 }
 0x619   : > { %v1950_v19 = vadd.f32 %v1949_v58, %v1908_v43 }
 0x61b   : > { %1960 = vst.msk [vmem:[%s3046_s14 + $0x8] sm:$0xff] %vm1958_vm11, %v1950_v19 }
 0x620   : > { %v1911_v59 = vpop.f32.mrf.mxu1 }
 0x621   : > { %v1953_v16 = vadd.f32 %v1952_v35, %v1911_v59 }
 0x623   : > { %1961 = vst.msk [vmem:[%s3046_s14 + $0x10] sm:$0xff] %vm1958_vm11, %v1953_v16 }
 0x628   : > { %v1914_v50 = vpop.f32.mrf.mxu1 }
 0x629   : > { %v1956_v5 = vadd.f32 %v1955_v63, %v1914_v50 }
 0x62b   : > { %1962 = vst.msk [vmem:[%s3046_s14 + $0x18] sm:$0xff] %vm1958_vm11, %v1956_v5 }
 0x62c   : > { %2578 = shalt.err (!%p2575_p4)
}
 0x62d   : > { %s2862_s14 = smov 128   ;;  %s2863_s26 = smov 8  }
 0x62e   : > { %2226 = dma.vmem_to_hbm [thread:$0]  (%p3006_p12), %s1979_s13, 512, %s1981_s23, %s1964_s30, %s2862_s14, %s2862_s14, %s2863_s26  }
 0x62f PF: > { %p2237_p5 = scmp.ge.s32.totalorder %s2761_s27, 2  ;;  %s1995_s20 = sand.u32 1, %s2721_s17  }
 0x630   : > { %s1996_s25 = scalar_lea.sflag [#allocation5], %s1995_s20 }
 0x631   : > { %p2233_p6 = pnand %p2237_p5, %p3019_p2 }
 0x633   : > { %p2234_p8 = pneg %p2233_p6 }
 0x635   : > { %2716 = dma.done.wait (%p2234_p8), %s1996_s25, 512  }
 0x636   : > { %2718 = vsyncadd (%p2234_p8), %s1996_s25, 4294966784  ;;  %s27_s27 = sadd.s32 1, %s2761_s27   ;;  %s4426_s12 = sld [smem:[#allocation16_spill]] }
 0x637   : > { %p24_p3 = scmp.ge.s32.totalorder %s27_s27, 6   ;;  %s4427_s11 = sld [smem:[#allocation15_spill]] }
 0x638   : > { %s4428_s23 = sld [smem:[#allocation10_spill]]  ;;  %s4432_s17 = smov %s2725_s18 }
 0x639   : > { %s4429_s24 = sld [smem:[#allocation11_spill]]  ;;  %s4433_s18 = smov %s2729_s19 }
 0x63a   : > { %s4430_s25 = sld [smem:[#allocation12_spill]]  ;;  %s4435_s20 = smov %s2737_s21 }
 0x63b   : > { %s4431_s26 = sld [smem:[#allocation13_spill]]  ;;  %s4436_s21 = smov %s2741_s22 }
 0x63c   : > { %s4434_s19 = smov %s4426_s12  ;;  %26 = sbr.rel (!%p24_p3) target bundleno = 15 (0xf), region = 162 }
 0x63d   : > { %s4437_s22 = smov %s4427_s11 }
 0x641   :  { %2002 = vsyncpa [#allocation4], 1 }
 0x642   :  { %2004 = vsyncpa [#allocation4 + $0x1], 1 }
 0x643   :  { %2005 = vsyncpa [#allocation5], 1 }
 0x644   :  { %2007 = vsyncpa [#allocation5 + $0x1], 1 }

</bundles_post_ra>
